<compile_context>
chip_gen: v6e
topology: v6e:2x2x1
jax: 0.10.0
libtpu: 0.0.40
codegen_flags: <defaults>
</compile_context>

<pallas_src>
import jax
import jax.numpy as jnp
from jax import lax
from jax.experimental import pallas as pl
from jax.experimental.pallas import tpu as pltpu

_LANES = 128


# ---------------------------------------------------------------------------
# Fused Pallas kernel: all RNN layers + FC head, whole sequence in-kernel,
# layer-major (batched ih-projection hoisted off the serial chain).
# ---------------------------------------------------------------------------
def _make_fused_rnn_kernel(num_layers, seq, batch):
    """kernel(refs): refs = (x_flat, [w_ih, w_hh, b]*L, w_fc, b_fc, out, p, h_all)."""

    def kernel(*refs):
        x_ref = refs[0]                                   # (seq*batch, in_dim)
        layer_refs = refs[1:1 + 3 * num_layers]
        wfc_ref = refs[1 + 3 * num_layers]                # (hidden, out_pad)
        bfc_ref = refs[2 + 3 * num_layers]                # (1, out_pad)
        o_ref = refs[3 + 3 * num_layers]                  # (batch, out_pad)
        p_ref = refs[4 + 3 * num_layers]                  # VMEM (seq*batch, hidden)
        h_all_ref = refs[5 + 3 * num_layers]              # VMEM (seq*batch, hidden)

        hidden = wfc_ref.shape[0]
        h_last = None

        for l in range(num_layers):
            # Only the current layer's weights are live at any time.
            w_ih = layer_refs[3 * l][...]                 # (in_l, hidden)
            w_hh = layer_refs[3 * l + 1][...]             # (hidden, hidden)
            b = layer_refs[3 * l + 2][...]                # (1, hidden)

            # Input-to-hidden projection for ALL timesteps as ONE matmul, with
            # the bias folded in (one broadcast per layer, off the serial
            # critical path).
            inp = x_ref[...] if l == 0 else h_all_ref[...]
            p_ref[...] = (
                jnp.dot(inp, w_ih, preferred_element_type=jnp.float32) + b
            )

            is_last = l == num_layers - 1

            def step(t, h, w_hh=w_hh, is_last=is_last):
                row = pl.multiple_of(t * batch, batch)
                pre = p_ref[pl.ds(row, batch), :]
                # Only h @ W_hh + tanh remain on the serial dependence chain.
                h_new = jnp.tanh(
                    pre + jnp.dot(h, w_hh, preferred_element_type=jnp.float32)
                )
                if not is_last:
                    # Next layer's batched projection needs every timestep.
                    h_all_ref[pl.ds(row, batch), :] = h_new
                return h_new

            h0 = jnp.zeros((batch, hidden), jnp.float32)   # torch: h0 = zeros
            h_last = lax.fori_loop(0, seq, step, h0, unroll=True)

        # Fused FC head; only these lane-dense logits ever hit HBM.
        o_ref[...] = (
            jnp.dot(h_last, wfc_ref[...], preferred_element_type=jnp.float32)
            + bfc_ref[...]
        ).astype(o_ref.dtype)

    return kernel


# ---------------------------------------------------------------------------
# Wrapper
# ---------------------------------------------------------------------------
@jax.jit
def rnn_model_forward(x, params):
    """x: (batch, seq, input_dim) float32 (batch_first, like the PyTorch module)."""
    batch, seq, in_dim = x.shape
    rnn_params = params["rnn"]
    num_layers = len(rnn_params)
    hidden = rnn_params[0][1].shape[0]
    out_dim = params["fc_w"].shape[1]

    # Time-major, flattened to (seq*batch, in) so each layer's ih projection is
    # a single big matmul.  x is tiny here; at scale, feed x time-major from
    # the caller instead of transposing in the wrapper.
    x_flat = jnp.transpose(x, (1, 0, 2)).reshape(seq * batch, in_dim)

    # Lane-pad the FC head so the kernel's single HBM store is lane-dense.
    out_pad = -(-out_dim // _LANES) * _LANES
    fc_w = jnp.pad(params["fc_w"], ((0, 0), (0, out_pad - out_dim)))
    fc_b = jnp.pad(params["fc_b"], ((0, 0), (0, out_pad - out_dim)))

    kernel = _make_fused_rnn_kernel(num_layers, seq, batch)

    # No grid: every operand is a single full block resident in VMEM; the layer
    # loop and time recurrence live entirely inside the kernel.
    in_specs = [pl.BlockSpec((seq * batch, in_dim), lambda: (0, 0))]
    operands = [x_flat]
    for (w_ih, w_hh, bias) in rnn_params:
        in_specs += [
            pl.BlockSpec(w_ih.shape, lambda: (0, 0)),
            pl.BlockSpec(w_hh.shape, lambda: (0, 0)),
            pl.BlockSpec(bias.shape, lambda: (0, 0)),
        ]
        operands += [w_ih, w_hh, bias]
    in_specs += [
        pl.BlockSpec((hidden, out_pad), lambda: (0, 0)),
        pl.BlockSpec((1, out_pad), lambda: (0, 0)),
    ]
    operands += [fc_w, fc_b]

    out_padded = pl.pallas_call(
        kernel,
        out_shape=jax.ShapeDtypeStruct((batch, out_pad), jnp.float32),
        in_specs=in_specs,
        out_specs=pl.BlockSpec((batch, out_pad), lambda: (0, 0)),
        scratch_shapes=[
            pltpu.VMEM((seq * batch, hidden), jnp.float32),  # ih projections
            pltpu.VMEM((seq * batch, hidden), jnp.float32),  # per-layer outputs
        ],
    )(*operands)

    return out_padded[:, :out_dim]


# ---------------------------------------------------------------------------
# Deterministic parameter init (PyTorch-style U(-1/sqrt(H), 1/sqrt(H)))
# ---------------------------------------------------------------------------
def init_params(key, input_dim, hidden_dim, layer_dim, output_dim):
    stdv = 1.0 / jnp.sqrt(jnp.float32(hidden_dim))
    params = {"rnn": []}
    for layer in range(layer_dim):
        in_dim = input_dim if layer == 0 else hidden_dim
        key, k1, k2, k3, k4 = jax.random.split(key, 5)
        # PyTorch stores W_ih as (hidden, in); we keep the transposed (in, hidden)
        # layout so the kernel does x @ W directly.
        w_ih = jax.random.uniform(k1, (in_dim, hidden_dim), jnp.float32, -stdv, stdv)
        w_hh = jax.random.uniform(k2, (hidden_dim, hidden_dim), jnp.float32, -stdv, stdv)
        b_ih = jax.random.uniform(k3, (hidden_dim,), jnp.float32, -stdv, stdv)
        b_hh = jax.random.uniform(k4, (hidden_dim,), jnp.float32, -stdv, stdv)
        bias = (b_ih + b_hh).reshape(1, hidden_dim)
        params["rnn"].append((w_ih, w_hh, bias))
    key, k5, k6 = jax.random.split(key, 3)
    fc_stdv = 1.0 / jnp.sqrt(jnp.float32(hidden_dim))
    params["fc_w"] = jax.random.uniform(
        k5, (hidden_dim, output_dim), jnp.float32, -fc_stdv, fc_stdv
    )
    params["fc_b"] = jax.random.uniform(
        k6, (1, output_dim), jnp.float32, -fc_stdv, fc_stdv
    ).astype(jnp.float32)
    return params


# ---------------------------------------------------------------------------
# Pure-JAX reference (same math) for a sanity check
# ---------------------------------------------------------------------------
def reference_forward(x, params):
    cur = jnp.transpose(x, (1, 0, 2))
    for (w_ih, w_hh, bias) in params["rnn"]:
        seq, batch, _ = cur.shape
        h = jnp.zeros((batch, w_hh.shape[0]), jnp.float32)
        ys = []
        for t in range(seq):
            h = jnp.tanh(cur[t] @ w_ih + h @ w_hh + bias)
            ys.append(h)
        cur = jnp.stack(ys, axis=0)
    return cur[-1] @ params["fc_w"] + params["fc_b"]


if __name__ == "__main__":
    # Small shapes consistent with the module's forward (batch_first).
    # batch raised to 32 per review (better MXU row utilization); hidden kept
    # at 32 for a quick run (module default is 100).
    batch, seq_len = 32, 8
    input_dim, hidden_dim, layer_dim, output_dim = 28, 32, 3, 10

    key = jax.random.PRNGKey(0)
    key, xkey = jax.random.split(key)
    x = jax.random.normal(xkey, (batch, seq_len, input_dim), jnp.float32)

    params = init_params(key, input_dim, hidden_dim, layer_dim, output_dim)

    out = rnn_model_forward(x, params)
    out = jax.block_until_ready(out)
    assert out.shape == (batch, output_dim), out.shape

    ref = reference_forward(x, params)
    assert jnp.allclose(out, ref, atol=1e-5, rtol=1e-5), (
        float(jnp.max(jnp.abs(out - ref)))
    )

    print("KERNEL_OK")
</pallas_src>

<mosaic_0001>
module attributes {stable_mosaic.version = 11 : i64} {
  func.func @kernel(%arg0: memref<256x28xf32, #tpu.memory_space<vmem>>, %arg1: memref<28x32xf32, #tpu.memory_space<vmem>>, %arg2: memref<32x32xf32, #tpu.memory_space<vmem>>, %arg3: memref<1x32xf32, #tpu.memory_space<vmem>>, %arg4: memref<32x32xf32, #tpu.memory_space<vmem>>, %arg5: memref<32x32xf32, #tpu.memory_space<vmem>>, %arg6: memref<1x32xf32, #tpu.memory_space<vmem>>, %arg7: memref<32x32xf32, #tpu.memory_space<vmem>>, %arg8: memref<32x32xf32, #tpu.memory_space<vmem>>, %arg9: memref<1x32xf32, #tpu.memory_space<vmem>>, %arg10: memref<32x128xf32, #tpu.memory_space<vmem>>, %arg11: memref<1x128xf32, #tpu.memory_space<vmem>>, %arg12: memref<32x128xf32, #tpu.memory_space<vmem>>, %arg13: memref<256x32xf32, #tpu.memory_space<vmem>>, %arg14: memref<256x32xf32, #tpu.memory_space<vmem>>) attributes {dimension_semantics = [], scalar_prefetch = 0 : i64, scratch_operands = 2 : i64, tpu.core_type = #tpu.core_type<tc>} {
    %c0 = arith.constant 0 : index
    %c0_0 = arith.constant 0 : index
    %0 = vector.load %arg1[%c0, %c0_0] : memref<28x32xf32, #tpu.memory_space<vmem>>, vector<28x32xf32>
    %c0_1 = arith.constant 0 : index
    %c0_2 = arith.constant 0 : index
    %1 = vector.load %arg2[%c0_1, %c0_2] : memref<32x32xf32, #tpu.memory_space<vmem>>, vector<32x32xf32>
    %c0_3 = arith.constant 0 : index
    %c0_4 = arith.constant 0 : index
    %2 = vector.load %arg3[%c0_3, %c0_4] : memref<1x32xf32, #tpu.memory_space<vmem>>, vector<1x32xf32>
    %c0_5 = arith.constant 0 : index
    %c0_6 = arith.constant 0 : index
    %3 = vector.load %arg0[%c0_5, %c0_6] : memref<256x28xf32, #tpu.memory_space<vmem>>, vector<256x28xf32>
    %cst = arith.constant dense<0.000000e+00> : vector<256x32xf32>
    %4 = tpu.matmul %3, %0, %cst {dimension_numbers = #tpu.dot_dimension_numbers<[1], [0], [0], [1], [0, 0, 1, 1], [], []>} : vector<256x28xf32>, vector<28x32xf32>, vector<256x32xf32> -> vector<256x32xf32>
    %5 = vector.broadcast %2 : vector<1x32xf32> to vector<256x32xf32>
    %6 = arith.addf %4, %5 : vector<256x32xf32>
    %c0_7 = arith.constant 0 : index
    %c0_8 = arith.constant 0 : index
    %7 = vector.load %arg13[%c0_7, %c0_8] : memref<256x32xf32, #tpu.memory_space<vmem>>, vector<256x32xf32>
    tpu.vector_store %arg13[%c0_7, %c0_8], %6 {strides = array<i32>} : memref<256x32xf32, #tpu.memory_space<vmem>>, vector<256x32xf32>,
    %cst_9 = arith.constant 0.000000e+00 : f32
    %8 = vector.broadcast %cst_9 : f32 to vector<32x32xf32>
    %c0_i32 = arith.constant 0 : i32
    %c32_i32 = arith.constant 32 : i32
    %9 = arith.muli %c0_i32, %c32_i32 : i32
    %10 = tpu.assume_multiple %9, 32 : i32
    %11 = arith.index_cast %10 : i32 to index
    %c0_10 = arith.constant 0 : index
    %12 = vector.load %arg13[%11, %c0_10] : memref<256x32xf32, #tpu.memory_space<vmem>>, vector<32x32xf32>
    %cst_11 = arith.constant dense<0.000000e+00> : vector<32x32xf32>
    %13 = tpu.matmul %8, %1, %cst_11 {dimension_numbers = #tpu.dot_dimension_numbers<[1], [0], [0], [1], [0, 0, 1, 1], [], []>} : vector<32x32xf32>, vector<32x32xf32>, vector<32x32xf32> -> vector<32x32xf32>
    %14 = arith.addf %12, %13 : vector<32x32xf32>
    %15 = math.tanh %14 : vector<32x32xf32>
    %16 = arith.index_cast %10 : i32 to index
    %c0_12 = arith.constant 0 : index
    %17 = vector.load %arg14[%16, %c0_12] : memref<256x32xf32, #tpu.memory_space<vmem>>, vector<32x32xf32>
    tpu.vector_store %arg14[%16, %c0_12], %15 {strides = array<i32>} : memref<256x32xf32, #tpu.memory_space<vmem>>, vector<32x32xf32>,
    %c1_i32 = arith.constant 1 : i32
    %c32_i32_13 = arith.constant 32 : i32
    %18 = arith.muli %c1_i32, %c32_i32_13 : i32
    %19 = tpu.assume_multiple %18, 32 : i32
    %20 = arith.index_cast %19 : i32 to index
    %c0_14 = arith.constant 0 : index
    %21 = vector.load %arg13[%20, %c0_14] : memref<256x32xf32, #tpu.memory_space<vmem>>, vector<32x32xf32>
    %cst_15 = arith.constant dense<0.000000e+00> : vector<32x32xf32>
    %22 = tpu.matmul %15, %1, %cst_15 {dimension_numbers = #tpu.dot_dimension_numbers<[1], [0], [0], [1], [0, 0, 1, 1], [], []>} : vector<32x32xf32>, vector<32x32xf32>, vector<32x32xf32> -> vector<32x32xf32>
    %23 = arith.addf %21, %22 : vector<32x32xf32>
    %24 = math.tanh %23 : vector<32x32xf32>
    %25 = arith.index_cast %19 : i32 to index
    %c0_16 = arith.constant 0 : index
    %26 = vector.load %arg14[%25, %c0_16] : memref<256x32xf32, #tpu.memory_space<vmem>>, vector<32x32xf32>
    tpu.vector_store %arg14[%25, %c0_16], %24 {strides = array<i32>} : memref<256x32xf32, #tpu.memory_space<vmem>>, vector<32x32xf32>,
    %c2_i32 = arith.constant 2 : i32
    %c32_i32_17 = arith.constant 32 : i32
    %27 = arith.muli %c2_i32, %c32_i32_17 : i32
    %28 = tpu.assume_multiple %27, 32 : i32
    %29 = arith.index_cast %28 : i32 to index
    %c0_18 = arith.constant 0 : index
    %30 = vector.load %arg13[%29, %c0_18] : memref<256x32xf32, #tpu.memory_space<vmem>>, vector<32x32xf32>
    %cst_19 = arith.constant dense<0.000000e+00> : vector<32x32xf32>
    %31 = tpu.matmul %24, %1, %cst_19 {dimension_numbers = #tpu.dot_dimension_numbers<[1], [0], [0], [1], [0, 0, 1, 1], [], []>} : vector<32x32xf32>, vector<32x32xf32>, vector<32x32xf32> -> vector<32x32xf32>
    %32 = arith.addf %30, %31 : vector<32x32xf32>
    %33 = math.tanh %32 : vector<32x32xf32>
    %34 = arith.index_cast %28 : i32 to index
    %c0_20 = arith.constant 0 : index
    %35 = vector.load %arg14[%34, %c0_20] : memref<256x32xf32, #tpu.memory_space<vmem>>, vector<32x32xf32>
    tpu.vector_store %arg14[%34, %c0_20], %33 {strides = array<i32>} : memref<256x32xf32, #tpu.memory_space<vmem>>, vector<32x32xf32>,
    %c3_i32 = arith.constant 3 : i32
    %c32_i32_21 = arith.constant 32 : i32
    %36 = arith.muli %c3_i32, %c32_i32_21 : i32
    %37 = tpu.assume_multiple %36, 32 : i32
    %38 = arith.index_cast %37 : i32 to index
    %c0_22 = arith.constant 0 : index
    %39 = vector.load %arg13[%38, %c0_22] : memref<256x32xf32, #tpu.memory_space<vmem>>, vector<32x32xf32>
    %cst_23 = arith.constant dense<0.000000e+00> : vector<32x32xf32>
    %40 = tpu.matmul %33, %1, %cst_23 {dimension_numbers = #tpu.dot_dimension_numbers<[1], [0], [0], [1], [0, 0, 1, 1], [], []>} : vector<32x32xf32>, vector<32x32xf32>, vector<32x32xf32> -> vector<32x32xf32>
    %41 = arith.addf %39, %40 : vector<32x32xf32>
    %42 = math.tanh %41 : vector<32x32xf32>
    %43 = arith.index_cast %37 : i32 to index
    %c0_24 = arith.constant 0 : index
    %44 = vector.load %arg14[%43, %c0_24] : memref<256x32xf32, #tpu.memory_space<vmem>>, vector<32x32xf32>
    tpu.vector_store %arg14[%43, %c0_24], %42 {strides = array<i32>} : memref<256x32xf32, #tpu.memory_space<vmem>>, vector<32x32xf32>,
    %c4_i32 = arith.constant 4 : i32
    %c32_i32_25 = arith.constant 32 : i32
    %45 = arith.muli %c4_i32, %c32_i32_25 : i32
    %46 = tpu.assume_multiple %45, 32 : i32
    %47 = arith.index_cast %46 : i32 to index
    %c0_26 = arith.constant 0 : index
    %48 = vector.load %arg13[%47, %c0_26] : memref<256x32xf32, #tpu.memory_space<vmem>>, vector<32x32xf32>
    %cst_27 = arith.constant dense<0.000000e+00> : vector<32x32xf32>
    %49 = tpu.matmul %42, %1, %cst_27 {dimension_numbers = #tpu.dot_dimension_numbers<[1], [0], [0], [1], [0, 0, 1, 1], [], []>} : vector<32x32xf32>, vector<32x32xf32>, vector<32x32xf32> -> vector<32x32xf32>
    %50 = arith.addf %48, %49 : vector<32x32xf32>
    %51 = math.tanh %50 : vector<32x32xf32>
    %52 = arith.index_cast %46 : i32 to index
    %c0_28 = arith.constant 0 : index
    %53 = vector.load %arg14[%52, %c0_28] : memref<256x32xf32, #tpu.memory_space<vmem>>, vector<32x32xf32>
    tpu.vector_store %arg14[%52, %c0_28], %51 {strides = array<i32>} : memref<256x32xf32, #tpu.memory_space<vmem>>, vector<32x32xf32>,
    %c5_i32 = arith.constant 5 : i32
    %c32_i32_29 = arith.constant 32 : i32
    %54 = arith.muli %c5_i32, %c32_i32_29 : i32
    %55 = tpu.assume_multiple %54, 32 : i32
    %56 = arith.index_cast %55 : i32 to index
    %c0_30 = arith.constant 0 : index
    %57 = vector.load %arg13[%56, %c0_30] : memref<256x32xf32, #tpu.memory_space<vmem>>, vector<32x32xf32>
    %cst_31 = arith.constant dense<0.000000e+00> : vector<32x32xf32>
    %58 = tpu.matmul %51, %1, %cst_31 {dimension_numbers = #tpu.dot_dimension_numbers<[1], [0], [0], [1], [0, 0, 1, 1], [], []>} : vector<32x32xf32>, vector<32x32xf32>, vector<32x32xf32> -> vector<32x32xf32>
    %59 = arith.addf %57, %58 : vector<32x32xf32>
    %60 = math.tanh %59 : vector<32x32xf32>
    %61 = arith.index_cast %55 : i32 to index
    %c0_32 = arith.constant 0 : index
    %62 = vector.load %arg14[%61, %c0_32] : memref<256x32xf32, #tpu.memory_space<vmem>>, vector<32x32xf32>
    tpu.vector_store %arg14[%61, %c0_32], %60 {strides = array<i32>} : memref<256x32xf32, #tpu.memory_space<vmem>>, vector<32x32xf32>,
    %c6_i32 = arith.constant 6 : i32
    %c32_i32_33 = arith.constant 32 : i32
    %63 = arith.muli %c6_i32, %c32_i32_33 : i32
    %64 = tpu.assume_multiple %63, 32 : i32
    %65 = arith.index_cast %64 : i32 to index
    %c0_34 = arith.constant 0 : index
    %66 = vector.load %arg13[%65, %c0_34] : memref<256x32xf32, #tpu.memory_space<vmem>>, vector<32x32xf32>
    %cst_35 = arith.constant dense<0.000000e+00> : vector<32x32xf32>
    %67 = tpu.matmul %60, %1, %cst_35 {dimension_numbers = #tpu.dot_dimension_numbers<[1], [0], [0], [1], [0, 0, 1, 1], [], []>} : vector<32x32xf32>, vector<32x32xf32>, vector<32x32xf32> -> vector<32x32xf32>
    %68 = arith.addf %66, %67 : vector<32x32xf32>
    %69 = math.tanh %68 : vector<32x32xf32>
    %70 = arith.index_cast %64 : i32 to index
    %c0_36 = arith.constant 0 : index
    %71 = vector.load %arg14[%70, %c0_36] : memref<256x32xf32, #tpu.memory_space<vmem>>, vector<32x32xf32>
    tpu.vector_store %arg14[%70, %c0_36], %69 {strides = array<i32>} : memref<256x32xf32, #tpu.memory_space<vmem>>, vector<32x32xf32>,
    %c7_i32 = arith.constant 7 : i32
    %c32_i32_37 = arith.constant 32 : i32
    %72 = arith.muli %c7_i32, %c32_i32_37 : i32
    %73 = tpu.assume_multiple %72, 32 : i32
    %74 = arith.index_cast %73 : i32 to index
    %c0_38 = arith.constant 0 : index
    %75 = vector.load %arg13[%74, %c0_38] : memref<256x32xf32, #tpu.memory_space<vmem>>, vector<32x32xf32>
    %cst_39 = arith.constant dense<0.000000e+00> : vector<32x32xf32>
    %76 = tpu.matmul %69, %1, %cst_39 {dimension_numbers = #tpu.dot_dimension_numbers<[1], [0], [0], [1], [0, 0, 1, 1], [], []>} : vector<32x32xf32>, vector<32x32xf32>, vector<32x32xf32> -> vector<32x32xf32>
    %77 = arith.addf %75, %76 : vector<32x32xf32>
    %78 = math.tanh %77 : vector<32x32xf32>
    %79 = arith.index_cast %73 : i32 to index
    %c0_40 = arith.constant 0 : index
    %80 = vector.load %arg14[%79, %c0_40] : memref<256x32xf32, #tpu.memory_space<vmem>>, vector<32x32xf32>
    tpu.vector_store %arg14[%79, %c0_40], %78 {strides = array<i32>} : memref<256x32xf32, #tpu.memory_space<vmem>>, vector<32x32xf32>,
    %c8_i32 = arith.constant 8 : i32
    %c0_41 = arith.constant 0 : index
    %c0_42 = arith.constant 0 : index
    %81 = vector.load %arg4[%c0_41, %c0_42] : memref<32x32xf32, #tpu.memory_space<vmem>>, vector<32x32xf32>
    %c0_43 = arith.constant 0 : index
    %c0_44 = arith.constant 0 : index
    %82 = vector.load %arg5[%c0_43, %c0_44] : memref<32x32xf32, #tpu.memory_space<vmem>>, vector<32x32xf32>
    %c0_45 = arith.constant 0 : index
    %c0_46 = arith.constant 0 : index
    %83 = vector.load %arg6[%c0_45, %c0_46] : memref<1x32xf32, #tpu.memory_space<vmem>>, vector<1x32xf32>
    %c0_47 = arith.constant 0 : index
    %c0_48 = arith.constant 0 : index
    %84 = vector.load %arg14[%c0_47, %c0_48] : memref<256x32xf32, #tpu.memory_space<vmem>>, vector<256x32xf32>
    %cst_49 = arith.constant dense<0.000000e+00> : vector<256x32xf32>
    %85 = tpu.matmul %84, %81, %cst_49 {dimension_numbers = #tpu.dot_dimension_numbers<[1], [0], [0], [1], [0, 0, 1, 1], [], []>} : vector<256x32xf32>, vector<32x32xf32>, vector<256x32xf32> -> vector<256x32xf32>
    %86 = vector.broadcast %83 : vector<1x32xf32> to vector<256x32xf32>
    %87 = arith.addf %85, %86 : vector<256x32xf32>
    %c0_50 = arith.constant 0 : index
    %c0_51 = arith.constant 0 : index
    %88 = vector.load %arg13[%c0_50, %c0_51] : memref<256x32xf32, #tpu.memory_space<vmem>>, vector<256x32xf32>
    tpu.vector_store %arg13[%c0_50, %c0_51], %87 {strides = array<i32>} : memref<256x32xf32, #tpu.memory_space<vmem>>, vector<256x32xf32>,
    %cst_52 = arith.constant 0.000000e+00 : f32
    %89 = vector.broadcast %cst_52 : f32 to vector<32x32xf32>
    %c0_i32_53 = arith.constant 0 : i32
    %c32_i32_54 = arith.constant 32 : i32
    %90 = arith.muli %c0_i32_53, %c32_i32_54 : i32
    %91 = tpu.assume_multiple %90, 32 : i32
    %92 = arith.index_cast %91 : i32 to index
    %c0_55 = arith.constant 0 : index
    %93 = vector.load %arg13[%92, %c0_55] : memref<256x32xf32, #tpu.memory_space<vmem>>, vector<32x32xf32>
    %cst_56 = arith.constant dense<0.000000e+00> : vector<32x32xf32>
    %94 = tpu.matmul %89, %82, %cst_56 {dimension_numbers = #tpu.dot_dimension_numbers<[1], [0], [0], [1], [0, 0, 1, 1], [], []>} : vector<32x32xf32>, vector<32x32xf32>, vector<32x32xf32> -> vector<32x32xf32>
    %95 = arith.addf %93, %94 : vector<32x32xf32>
    %96 = math.tanh %95 : vector<32x32xf32>
    %97 = arith.index_cast %91 : i32 to index
    %c0_57 = arith.constant 0 : index
    %98 = vector.load %arg14[%97, %c0_57] : memref<256x32xf32, #tpu.memory_space<vmem>>, vector<32x32xf32>
    tpu.vector_store %arg14[%97, %c0_57], %96 {strides = array<i32>} : memref<256x32xf32, #tpu.memory_space<vmem>>, vector<32x32xf32>,
    %c1_i32_58 = arith.constant 1 : i32
    %c32_i32_59 = arith.constant 32 : i32
    %99 = arith.muli %c1_i32_58, %c32_i32_59 : i32
    %100 = tpu.assume_multiple %99, 32 : i32
    %101 = arith.index_cast %100 : i32 to index
    %c0_60 = arith.constant 0 : index
    %102 = vector.load %arg13[%101, %c0_60] : memref<256x32xf32, #tpu.memory_space<vmem>>, vector<32x32xf32>
    %cst_61 = arith.constant dense<0.000000e+00> : vector<32x32xf32>
    %103 = tpu.matmul %96, %82, %cst_61 {dimension_numbers = #tpu.dot_dimension_numbers<[1], [0], [0], [1], [0, 0, 1, 1], [], []>} : vector<32x32xf32>, vector<32x32xf32>, vector<32x32xf32> -> vector<32x32xf32>
    %104 = arith.addf %102, %103 : vector<32x32xf32>
    %105 = math.tanh %104 : vector<32x32xf32>
    %106 = arith.index_cast %100 : i32 to index
    %c0_62 = arith.constant 0 : index
    %107 = vector.load %arg14[%106, %c0_62] : memref<256x32xf32, #tpu.memory_space<vmem>>, vector<32x32xf32>
    tpu.vector_store %arg14[%106, %c0_62], %105 {strides = array<i32>} : memref<256x32xf32, #tpu.memory_space<vmem>>, vector<32x32xf32>,
    %c2_i32_63 = arith.constant 2 : i32
    %c32_i32_64 = arith.constant 32 : i32
    %108 = arith.muli %c2_i32_63, %c32_i32_64 : i32
    %109 = tpu.assume_multiple %108, 32 : i32
    %110 = arith.index_cast %109 : i32 to index
    %c0_65 = arith.constant 0 : index
    %111 = vector.load %arg13[%110, %c0_65] : memref<256x32xf32, #tpu.memory_space<vmem>>, vector<32x32xf32>
    %cst_66 = arith.constant dense<0.000000e+00> : vector<32x32xf32>
    %112 = tpu.matmul %105, %82, %cst_66 {dimension_numbers = #tpu.dot_dimension_numbers<[1], [0], [0], [1], [0, 0, 1, 1], [], []>} : vector<32x32xf32>, vector<32x32xf32>, vector<32x32xf32> -> vector<32x32xf32>
    %113 = arith.addf %111, %112 : vector<32x32xf32>
    %114 = math.tanh %113 : vector<32x32xf32>
    %115 = arith.index_cast %109 : i32 to index
    %c0_67 = arith.constant 0 : index
    %116 = vector.load %arg14[%115, %c0_67] : memref<256x32xf32, #tpu.memory_space<vmem>>, vector<32x32xf32>
    tpu.vector_store %arg14[%115, %c0_67], %114 {strides = array<i32>} : memref<256x32xf32, #tpu.memory_space<vmem>>, vector<32x32xf32>,
    %c3_i32_68 = arith.constant 3 : i32
    %c32_i32_69 = arith.constant 32 : i32
    %117 = arith.muli %c3_i32_68, %c32_i32_69 : i32
    %118 = tpu.assume_multiple %117, 32 : i32
    %119 = arith.index_cast %118 : i32 to index
    %c0_70 = arith.constant 0 : index
    %120 = vector.load %arg13[%119, %c0_70] : memref<256x32xf32, #tpu.memory_space<vmem>>, vector<32x32xf32>
    %cst_71 = arith.constant dense<0.000000e+00> : vector<32x32xf32>
    %121 = tpu.matmul %114, %82, %cst_71 {dimension_numbers = #tpu.dot_dimension_numbers<[1], [0], [0], [1], [0, 0, 1, 1], [], []>} : vector<32x32xf32>, vector<32x32xf32>, vector<32x32xf32> -> vector<32x32xf32>
    %122 = arith.addf %120, %121 : vector<32x32xf32>
    %123 = math.tanh %122 : vector<32x32xf32>
    %124 = arith.index_cast %118 : i32 to index
    %c0_72 = arith.constant 0 : index
    %125 = vector.load %arg14[%124, %c0_72] : memref<256x32xf32, #tpu.memory_space<vmem>>, vector<32x32xf32>
    tpu.vector_store %arg14[%124, %c0_72], %123 {strides = array<i32>} : memref<256x32xf32, #tpu.memory_space<vmem>>, vector<32x32xf32>,
    %c4_i32_73 = arith.constant 4 : i32
    %c32_i32_74 = arith.constant 32 : i32
    %126 = arith.muli %c4_i32_73, %c32_i32_74 : i32
    %127 = tpu.assume_multiple %126, 32 : i32
    %128 = arith.index_cast %127 : i32 to index
    %c0_75 = arith.constant 0 : index
    %129 = vector.load %arg13[%128, %c0_75] : memref<256x32xf32, #tpu.memory_space<vmem>>, vector<32x32xf32>
    %cst_76 = arith.constant dense<0.000000e+00> : vector<32x32xf32>
    %130 = tpu.matmul %123, %82, %cst_76 {dimension_numbers = #tpu.dot_dimension_numbers<[1], [0], [0], [1], [0, 0, 1, 1], [], []>} : vector<32x32xf32>, vector<32x32xf32>, vector<32x32xf32> -> vector<32x32xf32>
    %131 = arith.addf %129, %130 : vector<32x32xf32>
    %132 = math.tanh %131 : vector<32x32xf32>
    %133 = arith.index_cast %127 : i32 to index
    %c0_77 = arith.constant 0 : index
    %134 = vector.load %arg14[%133, %c0_77] : memref<256x32xf32, #tpu.memory_space<vmem>>, vector<32x32xf32>
    tpu.vector_store %arg14[%133, %c0_77], %132 {strides = array<i32>} : memref<256x32xf32, #tpu.memory_space<vmem>>, vector<32x32xf32>,
    %c5_i32_78 = arith.constant 5 : i32
    %c32_i32_79 = arith.constant 32 : i32
    %135 = arith.muli %c5_i32_78, %c32_i32_79 : i32
    %136 = tpu.assume_multiple %135, 32 : i32
    %137 = arith.index_cast %136 : i32 to index
    %c0_80 = arith.constant 0 : index
    %138 = vector.load %arg13[%137, %c0_80] : memref<256x32xf32, #tpu.memory_space<vmem>>, vector<32x32xf32>
    %cst_81 = arith.constant dense<0.000000e+00> : vector<32x32xf32>
    %139 = tpu.matmul %132, %82, %cst_81 {dimension_numbers = #tpu.dot_dimension_numbers<[1], [0], [0], [1], [0, 0, 1, 1], [], []>} : vector<32x32xf32>, vector<32x32xf32>, vector<32x32xf32> -> vector<32x32xf32>
    %140 = arith.addf %138, %139 : vector<32x32xf32>
    %141 = math.tanh %140 : vector<32x32xf32>
    %142 = arith.index_cast %136 : i32 to index
    %c0_82 = arith.constant 0 : index
    %143 = vector.load %arg14[%142, %c0_82] : memref<256x32xf32, #tpu.memory_space<vmem>>, vector<32x32xf32>
    tpu.vector_store %arg14[%142, %c0_82], %141 {strides = array<i32>} : memref<256x32xf32, #tpu.memory_space<vmem>>, vector<32x32xf32>,
    %c6_i32_83 = arith.constant 6 : i32
    %c32_i32_84 = arith.constant 32 : i32
    %144 = arith.muli %c6_i32_83, %c32_i32_84 : i32
    %145 = tpu.assume_multiple %144, 32 : i32
    %146 = arith.index_cast %145 : i32 to index
    %c0_85 = arith.constant 0 : index
    %147 = vector.load %arg13[%146, %c0_85] : memref<256x32xf32, #tpu.memory_space<vmem>>, vector<32x32xf32>
    %cst_86 = arith.constant dense<0.000000e+00> : vector<32x32xf32>
    %148 = tpu.matmul %141, %82, %cst_86 {dimension_numbers = #tpu.dot_dimension_numbers<[1], [0], [0], [1], [0, 0, 1, 1], [], []>} : vector<32x32xf32>, vector<32x32xf32>, vector<32x32xf32> -> vector<32x32xf32>
    %149 = arith.addf %147, %148 : vector<32x32xf32>
    %150 = math.tanh %149 : vector<32x32xf32>
    %151 = arith.index_cast %145 : i32 to index
    %c0_87 = arith.constant 0 : index
    %152 = vector.load %arg14[%151, %c0_87] : memref<256x32xf32, #tpu.memory_space<vmem>>, vector<32x32xf32>
    tpu.vector_store %arg14[%151, %c0_87], %150 {strides = array<i32>} : memref<256x32xf32, #tpu.memory_space<vmem>>, vector<32x32xf32>,
    %c7_i32_88 = arith.constant 7 : i32
    %c32_i32_89 = arith.constant 32 : i32
    %153 = arith.muli %c7_i32_88, %c32_i32_89 : i32
    %154 = tpu.assume_multiple %153, 32 : i32
    %155 = arith.index_cast %154 : i32 to index
    %c0_90 = arith.constant 0 : index
    %156 = vector.load %arg13[%155, %c0_90] : memref<256x32xf32, #tpu.memory_space<vmem>>, vector<32x32xf32>
    %cst_91 = arith.constant dense<0.000000e+00> : vector<32x32xf32>
    %157 = tpu.matmul %150, %82, %cst_91 {dimension_numbers = #tpu.dot_dimension_numbers<[1], [0], [0], [1], [0, 0, 1, 1], [], []>} : vector<32x32xf32>, vector<32x32xf32>, vector<32x32xf32> -> vector<32x32xf32>
    %158 = arith.addf %156, %157 : vector<32x32xf32>
    %159 = math.tanh %158 : vector<32x32xf32>
    %160 = arith.index_cast %154 : i32 to index
    %c0_92 = arith.constant 0 : index
    %161 = vector.load %arg14[%160, %c0_92] : memref<256x32xf32, #tpu.memory_space<vmem>>, vector<32x32xf32>
    tpu.vector_store %arg14[%160, %c0_92], %159 {strides = array<i32>} : memref<256x32xf32, #tpu.memory_space<vmem>>, vector<32x32xf32>,
    %c8_i32_93 = arith.constant 8 : i32
    %c0_94 = arith.constant 0 : index
    %c0_95 = arith.constant 0 : index
    %162 = vector.load %arg7[%c0_94, %c0_95] : memref<32x32xf32, #tpu.memory_space<vmem>>, vector<32x32xf32>
    %c0_96 = arith.constant 0 : index
    %c0_97 = arith.constant 0 : index
    %163 = vector.load %arg8[%c0_96, %c0_97] : memref<32x32xf32, #tpu.memory_space<vmem>>, vector<32x32xf32>
    %c0_98 = arith.constant 0 : index
    %c0_99 = arith.constant 0 : index
    %164 = vector.load %arg9[%c0_98, %c0_99] : memref<1x32xf32, #tpu.memory_space<vmem>>, vector<1x32xf32>
    %c0_100 = arith.constant 0 : index
    %c0_101 = arith.constant 0 : index
    %165 = vector.load %arg14[%c0_100, %c0_101] : memref<256x32xf32, #tpu.memory_space<vmem>>, vector<256x32xf32>
    %cst_102 = arith.constant dense<0.000000e+00> : vector<256x32xf32>
    %166 = tpu.matmul %165, %162, %cst_102 {dimension_numbers = #tpu.dot_dimension_numbers<[1], [0], [0], [1], [0, 0, 1, 1], [], []>} : vector<256x32xf32>, vector<32x32xf32>, vector<256x32xf32> -> vector<256x32xf32>
    %167 = vector.broadcast %164 : vector<1x32xf32> to vector<256x32xf32>
    %168 = arith.addf %166, %167 : vector<256x32xf32>
    %c0_103 = arith.constant 0 : index
    %c0_104 = arith.constant 0 : index
    %169 = vector.load %arg13[%c0_103, %c0_104] : memref<256x32xf32, #tpu.memory_space<vmem>>, vector<256x32xf32>
    tpu.vector_store %arg13[%c0_103, %c0_104], %168 {strides = array<i32>} : memref<256x32xf32, #tpu.memory_space<vmem>>, vector<256x32xf32>,
    %cst_105 = arith.constant 0.000000e+00 : f32
    %170 = vector.broadcast %cst_105 : f32 to vector<32x32xf32>
    %c0_i32_106 = arith.constant 0 : i32
    %c32_i32_107 = arith.constant 32 : i32
    %171 = arith.muli %c0_i32_106, %c32_i32_107 : i32
    %172 = tpu.assume_multiple %171, 32 : i32
    %173 = arith.index_cast %172 : i32 to index
    %c0_108 = arith.constant 0 : index
    %174 = vector.load %arg13[%173, %c0_108] : memref<256x32xf32, #tpu.memory_space<vmem>>, vector<32x32xf32>
    %cst_109 = arith.constant dense<0.000000e+00> : vector<32x32xf32>
    %175 = tpu.matmul %170, %163, %cst_109 {dimension_numbers = #tpu.dot_dimension_numbers<[1], [0], [0], [1], [0, 0, 1, 1], [], []>} : vector<32x32xf32>, vector<32x32xf32>, vector<32x32xf32> -> vector<32x32xf32>
    %176 = arith.addf %174, %175 : vector<32x32xf32>
    %177 = math.tanh %176 : vector<32x32xf32>
    %c1_i32_110 = arith.constant 1 : i32
    %c32_i32_111 = arith.constant 32 : i32
    %178 = arith.muli %c1_i32_110, %c32_i32_111 : i32
    %179 = tpu.assume_multiple %178, 32 : i32
    %180 = arith.index_cast %179 : i32 to index
    %c0_112 = arith.constant 0 : index
    %181 = vector.load %arg13[%180, %c0_112] : memref<256x32xf32, #tpu.memory_space<vmem>>, vector<32x32xf32>
    %cst_113 = arith.constant dense<0.000000e+00> : vector<32x32xf32>
    %182 = tpu.matmul %177, %163, %cst_113 {dimension_numbers = #tpu.dot_dimension_numbers<[1], [0], [0], [1], [0, 0, 1, 1], [], []>} : vector<32x32xf32>, vector<32x32xf32>, vector<32x32xf32> -> vector<32x32xf32>
    %183 = arith.addf %181, %182 : vector<32x32xf32>
    %184 = math.tanh %183 : vector<32x32xf32>
    %c2_i32_114 = arith.constant 2 : i32
    %c32_i32_115 = arith.constant 32 : i32
    %185 = arith.muli %c2_i32_114, %c32_i32_115 : i32
    %186 = tpu.assume_multiple %185, 32 : i32
    %187 = arith.index_cast %186 : i32 to index
    %c0_116 = arith.constant 0 : index
    %188 = vector.load %arg13[%187, %c0_116] : memref<256x32xf32, #tpu.memory_space<vmem>>, vector<32x32xf32>
    %cst_117 = arith.constant dense<0.000000e+00> : vector<32x32xf32>
    %189 = tpu.matmul %184, %163, %cst_117 {dimension_numbers = #tpu.dot_dimension_numbers<[1], [0], [0], [1], [0, 0, 1, 1], [], []>} : vector<32x32xf32>, vector<32x32xf32>, vector<32x32xf32> -> vector<32x32xf32>
    %190 = arith.addf %188, %189 : vector<32x32xf32>
    %191 = math.tanh %190 : vector<32x32xf32>
    %c3_i32_118 = arith.constant 3 : i32
    %c32_i32_119 = arith.constant 32 : i32
    %192 = arith.muli %c3_i32_118, %c32_i32_119 : i32
    %193 = tpu.assume_multiple %192, 32 : i32
    %194 = arith.index_cast %193 : i32 to index
    %c0_120 = arith.constant 0 : index
    %195 = vector.load %arg13[%194, %c0_120] : memref<256x32xf32, #tpu.memory_space<vmem>>, vector<32x32xf32>
    %cst_121 = arith.constant dense<0.000000e+00> : vector<32x32xf32>
    %196 = tpu.matmul %191, %163, %cst_121 {dimension_numbers = #tpu.dot_dimension_numbers<[1], [0], [0], [1], [0, 0, 1, 1], [], []>} : vector<32x32xf32>, vector<32x32xf32>, vector<32x32xf32> -> vector<32x32xf32>
    %197 = arith.addf %195, %196 : vector<32x32xf32>
    %198 = math.tanh %197 : vector<32x32xf32>
    %c4_i32_122 = arith.constant 4 : i32
    %c32_i32_123 = arith.constant 32 : i32
    %199 = arith.muli %c4_i32_122, %c32_i32_123 : i32
    %200 = tpu.assume_multiple %199, 32 : i32
    %201 = arith.index_cast %200 : i32 to index
    %c0_124 = arith.constant 0 : index
    %202 = vector.load %arg13[%201, %c0_124] : memref<256x32xf32, #tpu.memory_space<vmem>>, vector<32x32xf32>
    %cst_125 = arith.constant dense<0.000000e+00> : vector<32x32xf32>
    %203 = tpu.matmul %198, %163, %cst_125 {dimension_numbers = #tpu.dot_dimension_numbers<[1], [0], [0], [1], [0, 0, 1, 1], [], []>} : vector<32x32xf32>, vector<32x32xf32>, vector<32x32xf32> -> vector<32x32xf32>
    %204 = arith.addf %202, %203 : vector<32x32xf32>
    %205 = math.tanh %204 : vector<32x32xf32>
    %c5_i32_126 = arith.constant 5 : i32
    %c32_i32_127 = arith.constant 32 : i32
    %206 = arith.muli %c5_i32_126, %c32_i32_127 : i32
    %207 = tpu.assume_multiple %206, 32 : i32
    %208 = arith.index_cast %207 : i32 to index
    %c0_128 = arith.constant 0 : index
    %209 = vector.load %arg13[%208, %c0_128] : memref<256x32xf32, #tpu.memory_space<vmem>>, vector<32x32xf32>
    %cst_129 = arith.constant dense<0.000000e+00> : vector<32x32xf32>
    %210 = tpu.matmul %205, %163, %cst_129 {dimension_numbers = #tpu.dot_dimension_numbers<[1], [0], [0], [1], [0, 0, 1, 1], [], []>} : vector<32x32xf32>, vector<32x32xf32>, vector<32x32xf32> -> vector<32x32xf32>
    %211 = arith.addf %209, %210 : vector<32x32xf32>
    %212 = math.tanh %211 : vector<32x32xf32>
    %c6_i32_130 = arith.constant 6 : i32
    %c32_i32_131 = arith.constant 32 : i32
    %213 = arith.muli %c6_i32_130, %c32_i32_131 : i32
    %214 = tpu.assume_multiple %213, 32 : i32
    %215 = arith.index_cast %214 : i32 to index
    %c0_132 = arith.constant 0 : index
    %216 = vector.load %arg13[%215, %c0_132] : memref<256x32xf32, #tpu.memory_space<vmem>>, vector<32x32xf32>
    %cst_133 = arith.constant dense<0.000000e+00> : vector<32x32xf32>
    %217 = tpu.matmul %212, %163, %cst_133 {dimension_numbers = #tpu.dot_dimension_numbers<[1], [0], [0], [1], [0, 0, 1, 1], [], []>} : vector<32x32xf32>, vector<32x32xf32>, vector<32x32xf32> -> vector<32x32xf32>
    %218 = arith.addf %216, %217 : vector<32x32xf32>
    %219 = math.tanh %218 : vector<32x32xf32>
    %c7_i32_134 = arith.constant 7 : i32
    %c32_i32_135 = arith.constant 32 : i32
    %220 = arith.muli %c7_i32_134, %c32_i32_135 : i32
    %221 = tpu.assume_multiple %220, 32 : i32
    %222 = arith.index_cast %221 : i32 to index
    %c0_136 = arith.constant 0 : index
    %223 = vector.load %arg13[%222, %c0_136] : memref<256x32xf32, #tpu.memory_space<vmem>>, vector<32x32xf32>
    %cst_137 = arith.constant dense<0.000000e+00> : vector<32x32xf32>
    %224 = tpu.matmul %219, %163, %cst_137 {dimension_numbers = #tpu.dot_dimension_numbers<[1], [0], [0], [1], [0, 0, 1, 1], [], []>} : vector<32x32xf32>, vector<32x32xf32>, vector<32x32xf32> -> vector<32x32xf32>
    %225 = arith.addf %223, %224 : vector<32x32xf32>
    %226 = math.tanh %225 : vector<32x32xf32>
    %c8_i32_138 = arith.constant 8 : i32
    %c0_139 = arith.constant 0 : index
    %c0_140 = arith.constant 0 : index
    %227 = vector.load %arg10[%c0_139, %c0_140] : memref<32x128xf32, #tpu.memory_space<vmem>>, vector<32x128xf32>
    %cst_141 = arith.constant dense<0.000000e+00> : vector<32x128xf32>
    %228 = tpu.matmul %226, %227, %cst_141 {dimension_numbers = #tpu.dot_dimension_numbers<[1], [0], [0], [1], [0, 0, 1, 1], [], []>} : vector<32x32xf32>, vector<32x128xf32>, vector<32x128xf32> -> vector<32x128xf32>
    %c0_142 = arith.constant 0 : index
    %c0_143 = arith.constant 0 : index
    %229 = vector.load %arg11[%c0_142, %c0_143] : memref<1x128xf32, #tpu.memory_space<vmem>>, vector<1x128xf32>
    %230 = vector.broadcast %229 : vector<1x128xf32> to vector<32x128xf32>
    %231 = arith.addf %228, %230 : vector<32x128xf32>
    %c0_144 = arith.constant 0 : index
    %c0_145 = arith.constant 0 : index
    %232 = vector.load %arg12[%c0_144, %c0_145] : memref<32x128xf32, #tpu.memory_space<vmem>>, vector<32x128xf32>
    tpu.vector_store %arg12[%c0_144, %c0_145], %231 {strides = array<i32>} : memref<32x128xf32, #tpu.memory_space<vmem>>, vector<32x128xf32>,
    return
  }
}

</mosaic_0001>

<bundles_post_ra>
// kernel: rnn_model_forward.1
= control target key start
LH: loop header
LB: loop body
LE: loop exit
PB: predicated region body
PF: predicated region fallthrough
CT: control target
= control target key end

     0   :  { %vm185_vm0 = vcmask 1043456   ;;  %vm88_vm1 = vcmask 228352   ;;  %v5242_v2 = vmov 0.0   ;;  %vm414_vm2 = vcmask 261120   ;;  %s6189_s1 = inlined_call_operand.vmem [shape: f32[28,32], index: 1, kind: input, shape index: {}]   ;;  %s6190_s0 = inlined_call_operand.vmem [shape: f32[256,28], index: 0, kind: input, shape index: {}]   ;;  %s6191_s2 = inlined_call_operand.vmem [shape: f32[32,32], index: 2, kind: input, shape index: {}]   ;;  %s6192_s4 = inlined_call_operand.vmem [shape: f32[32,32], index: 4, kind: input, shape index: {}]   ;;  %s6193_s3 = inlined_call_operand.vmem [shape: f32[1,32], index: 3, kind: input, shape index: {}]   ;;  %s6194_s6 = inlined_call_operand.vmem [shape: f32[1,32], index: 6, kind: input, shape index: {}]   ;;  %s6195_s5 = inlined_call_operand.vmem [shape: f32[32,32], index: 5, kind: input, shape index: {}]   ;;  %s6196_s7 = inlined_call_operand.vmem [shape: f32[32,32], index: 7, kind: input, shape index: {}]   ;;  %s6197_s9 = inlined_call_operand.vmem [shape: f32[1,32], index: 9, kind: input, shape index: {}]   ;;  %s6198_s8 = inlined_call_operand.vmem [shape: f32[32,32], index: 8, kind: input, shape index: {}]   ;;  %s6199_s10 = inlined_call_operand.vmem [shape: f32[32,128], index: 10, kind: input, shape index: {}]   ;;  %s6200_s11 = inlined_call_operand.vmem [shape: f32[1,128], index: 11, kind: input, shape index: {}]   ;;  %s6201_s12 = inlined_call_operand.vmem [shape: f32[32,128], index: 12, kind: output, shape index: {}]  }
   0x1   :  { %v44_v0 = vld [vmem:[%s6189_s1 + $0x18] sm:$0xf]  ;;  %v43_v1 = vld [vmem:[%s6189_s1 + $0x10] sm:$0xff]  ;;  %4585 = vmatprep.mubr.f32.mxu1 %v5242_v2  ;;  %v50_v3 = vld [vmem:[%s6190_s0] sm:$0xff] }
   0x2   :  { %4521 = vmatprep.subr.msk.mxu0 %vm185_vm0, %v44_v0  ;;  %v42_v4 = vld [vmem:[%s6189_s1 + $0x8] sm:$0xff]  ;;  %4529 = vmatprep.mubr.msk.f32.mxu0 %vm88_vm1, %v50_v3  ;;  %v5325_v5 = vld [vmem:[%s6191_s2 + $0x18] sm:$0xff]  ;;  %v5330_v6 = vld [vmem:[%s6191_s2 + $0x10] sm:$0xff] }
   0x3   :  { %4522 = vmatpush3.msk.msra.mxu0 %vm185_vm0, %v44_v0  ;;  %4577 = vmatprep.subr.mxu1 %v5325_v5  ;;  %v41_v7 = vld [vmem:[%s6189_s1] sm:$0xff]  ;;  %v5340_v8 = vld [vmem:[%s6191_s2 + $0x8] sm:$0xff]  ;;  %v52_v11 = vld [vmem:[%s6190_s0 + $0x10] sm:$0xff] }
   0x4   :  { %4523 = vmatprep.subr.mxu0 %v43_v1  ;;  %4578 = vmatpush3.msra.mxu1 %v5325_v5  ;;  %v51_v9 = vld [vmem:[%s6190_s0 + $0x8] sm:$0xff]  ;;  %v5350_v10 = vld [vmem:[%s6191_s2] sm:$0xff]  ;;  %v53_v12 = vld [vmem:[%s6190_s0 + $0x18] sm:$0xff] }
   0x5   :  { %4524 = vmatpush3.msra.mxu0 %v43_v1  ;;  %4579 = vmatprep.subr.mxu1 %v5330_v6  ;;  %v54_v13 = vld [vmem:[%s6190_s0 + $0x20] sm:$0xff]  ;;  %v55_v14 = vld [vmem:[%s6190_s0 + $0x28] sm:$0xff]  ;;  %v56_v15 = vld [vmem:[%s6190_s0 + $0x30] sm:$0xff] }
   0x6   :  { %4525 = vmatprep.subr.mxu0 %v42_v4  ;;  %4580 = vmatpush3.msra.mxu1 %v5330_v6  ;;  %v57_v16 = vld [vmem:[%s6190_s0 + $0x38] sm:$0xff]  ;;  %v58_v17 = vld [vmem:[%s6190_s0 + $0x40] sm:$0xff]  ;;  %v59_v18 = vld [vmem:[%s6190_s0 + $0x48] sm:$0xff] }
   0x7   :  { %4526 = vmatpush3.msra.mxu0 %v42_v4  ;;  %4581 = vmatprep.subr.mxu1 %v5340_v8  ;;  %v60_v19 = vld [vmem:[%s6190_s0 + $0x50] sm:$0xff]  ;;  %v61_v20 = vld [vmem:[%s6190_s0 + $0x58] sm:$0xff]  ;;  %v62_v21 = vld [vmem:[%s6190_s0 + $0x60] sm:$0xff] }
   0x8   :  { %4527 = vmatprep.subr.mxu0 %v41_v7  ;;  %4582 = vmatpush3.msra.mxu1 %v5340_v8  ;;  %v63_v22 = vld [vmem:[%s6190_s0 + $0x68] sm:$0xff]  ;;  %v64_v23 = vld [vmem:[%s6190_s0 + $0x70] sm:$0xff]  ;;  %v65_v24 = vld [vmem:[%s6190_s0 + $0x78] sm:$0xff] }
   0x9   :  { %4528 = vmatpush3.msra.mxu0 %v41_v7  ;;  %4583 = vmatprep.subr.mxu1 %v5350_v10  ;;  %v66_v25 = vld [vmem:[%s6190_s0 + $0x80] sm:$0xff]  ;;  %v67_v26 = vld [vmem:[%s6190_s0 + $0x88] sm:$0xff]  ;;  %v68_v27 = vld [vmem:[%s6190_s0 + $0x90] sm:$0xff] }
   0xa   :  { %4530 = vmatmul.mubr.msk.f32.vlgmr.msra.gmra.mxu0 %vm88_vm1, %v51_v9  ;;  %4584 = vmatpush3.msra.mxu1 %v5350_v10  ;;  %v69_v28 = vld [vmem:[%s6190_s0 + $0x98] sm:$0xff]  ;;  %v70_v29 = vld [vmem:[%s6190_s0 + $0xa0] sm:$0xff]  ;;  %v71_v30 = vld [vmem:[%s6190_s0 + $0xa8] sm:$0xff] }
   0xb   :  { %4532 = vmatprep.mubr.msk.f32.mxu0 %vm88_vm1, %v52_v11  ;;  %4586 = vmatmul.mubr.f32.vlgmr.msra.gmra.mxu1 %v5242_v2  ;;  %v72_v31 = vld [vmem:[%s6190_s0 + $0xb0] sm:$0xff]  ;;  %v73_v32 = vld [vmem:[%s6190_s0 + $0xb8] sm:$0xff]  ;;  %v74_v33 = vld [vmem:[%s6190_s0 + $0xc0] sm:$0xff] }
   0xc   :  { %4591 = vmatprep.subr.mxu1 %v5325_v5  ;;  %4588 = vmatprep.mubr.f32.mxu1 %v5242_v2  ;;  %v75_v34 = vld [vmem:[%s6190_s0 + $0xc8] sm:$0xff]  ;;  %v76_v35 = vld [vmem:[%s6190_s0 + $0xd0] sm:$0xff]  ;;  %v77_v36 = vld [vmem:[%s6190_s0 + $0xd8] sm:$0xff] }
   0xd   :  { %4592 = vmatpush3.msra.mxu1 %v5325_v5  ;;  %v78_v37 = vld [vmem:[%s6190_s0 + $0xe0] sm:$0xff]  ;;  %v79_v38 = vld [vmem:[%s6190_s0 + $0xe8] sm:$0xff]  ;;  %v1359_v39 = vld [vmem:[%s6192_s4 + $0x18] sm:$0xff] }
   0xe   :  { %4533 = vmatmul.mubr.msk.f32.gmra.mxu0 %vm88_vm1, %v53_v12  ;;  %4593 = vmatprep.subr.mxu1 %v5330_v6  ;;  %v1358_v40 = vld [vmem:[%s6192_s4 + $0x10] sm:$0xff]  ;;  %v81_v42 = vld [vmem:[%s6190_s0 + $0xf8] sm:$0xff]  ;;  %v1357_v43 = vld [vmem:[%s6192_s4 + $0x8] sm:$0xff] }
   0xf   :  { %4535 = vmatprep.mubr.msk.f32.mxu0 %vm88_vm1, %v54_v13  ;;  %4594 = vmatpush3.msra.mxu1 %v5330_v6  ;;  %v80_v41 = vld [vmem:[%s6190_s0 + $0xf0] sm:$0xff]  ;;  %v1356_v44 = vld [vmem:[%s6192_s4] sm:$0xff] }
  0x10   :  { %4589 = vmatmul.mubr.f32.gmra.mxu1 %v5242_v2  ;;  %4595 = vmatprep.subr.mxu1 %v5340_v8  ;;  %v5504_v45 = vld [vmem:[%s6193_s3] ss:$0 sm:$0xff] }
  0x11   :  { %4596 = vmatpush3.msra.mxu1 %v5340_v8  ;;  %4689 = vmatprep.subr.mxu0 %v1359_v39 }
  0x12   :  { %4536 = vmatmul.mubr.msk.f32.gmra.mxu0 %vm88_vm1, %v55_v14  ;;  %4597 = vmatprep.subr.mxu1 %v5350_v10 }
  0x13   :  { %4538 = vmatprep.mubr.msk.f32.mxu0 %vm88_vm1, %v56_v15  ;;  %4598 = vmatpush3.msra.mxu1 %v5350_v10 }
  0x14   :  { %4605 = vmatprep.subr.mxu1 %v5325_v5  ;;  %4690 = vmatpush3.msra.mxu0 %v1359_v39 }
  0x15   :  { %4691 = vmatprep.subr.mxu0 %v1358_v40 }
  0x16   :  { %4539 = vmatmul.mubr.msk.f32.gmra.mxu0 %vm88_vm1, %v57_v16 }
  0x17   :  { %4541 = vmatprep.mubr.msk.f32.mxu0 %vm88_vm1, %v58_v17  ;;  %4692 = vmatpush3.msra.mxu0 %v1358_v40 }
  0x18   :  { %4693 = vmatprep.subr.mxu0 %v1357_v43 }
  0x19   :  { %4694 = vmatpush3.msra.mxu0 %v1357_v43 }
  0x1a   :  { %4542 = vmatmul.mubr.msk.f32.gmra.mxu0 %vm88_vm1, %v59_v18  ;;  %4695 = vmatprep.subr.mxu0 %v1356_v44 }
  0x1b   :  { %4544 = vmatprep.mubr.msk.f32.mxu0 %vm88_vm1, %v60_v19  ;;  %4696 = vmatpush3.msra.mxu0 %v1356_v44 }
  0x1e   :  { %4545 = vmatmul.mubr.msk.f32.gmra.mxu0 %vm88_vm1, %v61_v20 }
  0x1f   :  { %4547 = vmatprep.mubr.msk.f32.mxu0 %vm88_vm1, %v62_v21 }
  0x22   :  { %4548 = vmatmul.mubr.msk.f32.gmra.mxu0 %vm88_vm1, %v63_v22 }
  0x23   :  { %4550 = vmatprep.mubr.msk.f32.mxu0 %vm88_vm1, %v64_v23 }
  0x26   :  { %4551 = vmatmul.mubr.msk.f32.gmra.mxu0 %vm88_vm1, %v65_v24 }
  0x27   :  { %4553 = vmatprep.mubr.msk.f32.mxu0 %vm88_vm1, %v66_v25 }
  0x2a   :  { %4554 = vmatmul.mubr.msk.f32.gmra.mxu0 %vm88_vm1, %v67_v26 }
  0x2b   :  { %4556 = vmatprep.mubr.msk.f32.mxu0 %vm88_vm1, %v68_v27 }
  0x2e   :  { %4557 = vmatmul.mubr.msk.f32.gmra.mxu0 %vm88_vm1, %v69_v28 }
  0x2f   :  { %4559 = vmatprep.mubr.msk.f32.mxu0 %vm88_vm1, %v70_v29 }
  0x32   :  { %4560 = vmatmul.mubr.msk.f32.gmra.mxu0 %vm88_vm1, %v71_v30 }
  0x33   :  { %4562 = vmatprep.mubr.msk.f32.mxu0 %vm88_vm1, %v72_v31 }
  0x36   :  { %4563 = vmatmul.mubr.msk.f32.gmra.mxu0 %vm88_vm1, %v73_v32 }
  0x37   :  { %4565 = vmatprep.mubr.msk.f32.mxu0 %vm88_vm1, %v74_v33 }
  0x3a   :  { %4566 = vmatmul.mubr.msk.f32.gmra.mxu0 %vm88_vm1, %v75_v34 }
  0x3b   :  { %4568 = vmatprep.mubr.msk.f32.mxu0 %vm88_vm1, %v76_v35 }
  0x3e   :  { %4569 = vmatmul.mubr.msk.f32.gmra.mxu0 %vm88_vm1, %v77_v36 }
  0x3f   :  { %4571 = vmatprep.mubr.msk.f32.mxu0 %vm88_vm1, %v78_v37 }
  0x42   :  { %4572 = vmatmul.mubr.msk.f32.gmra.mxu0 %vm88_vm1, %v79_v38 }
  0x43   :  { %4574 = vmatprep.mubr.msk.f32.mxu0 %vm88_vm1, %v80_v41 }
  0x46   :  { %4575 = vmatmul.mubr.msk.f32.gmra.mxu0 %vm88_vm1, %v81_v42 }
  0xca   :  { %v4531_v46 = vpop.f32.mrf.mxu0 }
  0xcb   :  { %v261_v47 = vadd.f32 %v4531_v46, %v5504_v45  ;;  %v4587_v51 = vpop.f32.mrf.mxu1 }
  0xcc   :  { %v255_v48 = vpop.f32.mrf.mxu0 }
  0xcd   :  { %416 = vst.msk [vmem:[#allocation2 + $0x8] sm:$0xff] %vm414_vm2, %v261_v47  ;;  %v256_v49 = vadd.f32 %v5504_v45, %v255_v48  ;;  %v520_v55 = vpop.f32.mrf.mxu1 }
  0xce   :  { %v4534_v50 = vpop.f32.mrf.mxu0 }
  0xcf   :  { %415 = vst.msk [vmem:[#allocation2] sm:$0xff] %vm414_vm2, %v256_v49  ;;  %v271_v52 = vadd.f32 %v4534_v50, %v5504_v45 }
  0xd0   :  { %v265_v53 = vpop.f32.mrf.mxu0  ;;  %v4590_v63 = vpop.f32.mrf.mxu1 }
  0xd1   :  { %418 = vst.msk [vmem:[#allocation2 + $0x18] sm:$0xff] %vm414_vm2, %v271_v52  ;;  %v266_v54 = vadd.f32 %v5504_v45, %v265_v53 }
  0xd2   :  { %v4537_v56 = vpop.f32.mrf.mxu0  ;;  %v530_v13 = vpop.f32.mrf.mxu1 }
  0xd3   :  { %417 = vst.msk [vmem:[#allocation2 + $0x10] sm:$0xff] %vm414_vm2, %v266_v54  ;;  %v281_v57 = vadd.f32 %v4537_v56, %v5504_v45 }
  0xd4   :  { %v448_v58 = vld [vmem:[#allocation2 + $0x8] sm:$0xff]  ;;  %v275_v59 = vpop.f32.mrf.mxu0 }
  0xd5   :  { %v540_v60 = vadd.f32 %v4587_v51, %v448_v58  ;;  %420 = vst.msk [vmem:[#allocation2 + $0x28] sm:$0xff] %vm414_vm2, %v281_v57  ;;  %v276_v61 = vadd.f32 %v5504_v45, %v275_v59 }
  0xd6   :  { %v447_v62 = vld [vmem:[#allocation2] sm:$0xff]  ;;  %v4540_v0 = vpop.f32.mrf.mxu0 }
  0xd7   :  { %5048 = vtanh.f32 %v540_v60  ;;  %v539_v1 = vadd.f32 %v520_v55, %v447_v62  ;;  %419 = vst.msk [vmem:[#allocation2 + $0x20] sm:$0xff] %vm414_vm2, %v276_v61  ;;  %v291_v3 = vadd.f32 %v4540_v0, %v5504_v45 }
  0xd8   :  { %v450_v4 = vld [vmem:[#allocation2 + $0x18] sm:$0xff]  ;;  %v285_v7 = vpop.f32.mrf.mxu0 }
  0xd9   :  { %5050 = vtanh.f32 %v539_v1  ;;  %v542_v9 = vadd.f32 %v4590_v63, %v450_v4  ;;  %422 = vst.msk [vmem:[#allocation2 + $0x38] sm:$0xff] %vm414_vm2, %v291_v3  ;;  %v286_v11 = vadd.f32 %v5504_v45, %v285_v7 }
  0xda   :  { %v449_v12 = vld [vmem:[#allocation2 + $0x10] sm:$0xff]  ;;  %v4543_v14 = vpop.f32.mrf.mxu0 }
  0xdb   :  { %5052 = vtanh.f32 %v542_v9  ;;  %v541_v15 = vadd.f32 %v530_v13, %v449_v12  ;;  %421 = vst.msk [vmem:[#allocation2 + $0x30] sm:$0xff] %vm414_vm2, %v286_v11  ;;  %v301_v16 = vadd.f32 %v4543_v14, %v5504_v45 }
  0xdc   :  { %v295_v17 = vpop.f32.mrf.mxu0  ;;  %v553_v13 = vld [vmem:[#allocation2 + $0x28] sm:$0xff] }
  0xdd   :  { %5054 = vtanh.f32 %v541_v15  ;;  %424 = vst.msk [vmem:[#allocation2 + $0x48] sm:$0xff] %vm414_vm2, %v301_v16  ;;  %v296_v18 = vadd.f32 %v5504_v45, %v295_v17 }
  0xde   :  { %v4546_v19 = vpop.f32.mrf.mxu0  ;;  %v552_v16 = vld [vmem:[#allocation2 + $0x20] sm:$0xff] }
  0xdf   :  { %423 = vst.msk [vmem:[#allocation2 + $0x40] sm:$0xff] %vm414_vm2, %v296_v18  ;;  %v311_v20 = vadd.f32 %v4546_v19, %v5504_v45 }
  0xe0   :  { %v305_v21 = vpop.f32.mrf.mxu0  ;;  %v555_v18 = vld [vmem:[#allocation2 + $0x38] sm:$0xff] }
  0xe1   :  { %426 = vst.msk [vmem:[#allocation2 + $0x58] sm:$0xff] %vm414_vm2, %v311_v20  ;;  %v306_v22 = vadd.f32 %v5504_v45, %v305_v21 }
  0xe2   :  { %v4549_v23 = vpop.f32.mrf.mxu0 }
  0xe3   :  { %425 = vst.msk [vmem:[#allocation2 + $0x50] sm:$0xff] %vm414_vm2, %v306_v22  ;;  %v321_v24 = vadd.f32 %v4549_v23, %v5504_v45  ;;  %v554_v22 = vld [vmem:[#allocation2 + $0x30] sm:$0xff] }
  0xe4   :  { %v5049_v25 = vpop.eup %5048  ;;  %v315_v26 = vpop.f32.mrf.mxu0 }
  0xe5   :  { %548 = vst.msk [vmem:[#allocation3 + $0x8] sm:$0xff] %vm414_vm2, %v5049_v25  ;;  %428 = vst.msk [vmem:[#allocation2 + $0x68] sm:$0xff] %vm414_vm2, %v321_v24  ;;  %v316_v27 = vadd.f32 %v5504_v45, %v315_v26  ;;  %v5593_v24 = vld [vmem:[%s6194_s6] ss:$0 sm:$0xff] }
  0xe6   :  { %v5051_v28 = vpop.eup %5050  ;;  %v4552_v35 = vpop.f32.mrf.mxu0 }
  0xe7   :  { %547 = vst.msk [vmem:[#allocation3] sm:$0xff] %vm414_vm2, %v5051_v28  ;;  %4599 = vmatprep.mubr.msk.f32.mxu1 %vm414_vm2, %v5051_v28  ;;  %427 = vst.msk [vmem:[#allocation2 + $0x60] sm:$0xff] %vm414_vm2, %v316_v27  ;;  %v331_v36 = vadd.f32 %v4552_v35, %v5504_v45 }
  0xe8   :  { %v5053_v29 = vpop.eup %5052  ;;  %4600 = vmatmul.mubr.msk.f32.vlgmr.msra.gmra.mxu1 %vm414_vm2, %v5049_v25  ;;  %v325_v37 = vpop.f32.mrf.mxu0 }
  0xe9   :  { %550 = vst.msk [vmem:[#allocation3 + $0x18] sm:$0xff] %vm414_vm2, %v5053_v29  ;;  %4606 = vmatpush3.msra.mxu1 %v5325_v5  ;;  %430 = vst.msk [vmem:[#allocation2 + $0x78] sm:$0xff] %vm414_vm2, %v331_v36  ;;  %v326_v38 = vadd.f32 %v5504_v45, %v325_v37 }
  0xea   :  { %v5055_v30 = vpop.eup %5054  ;;  %4607 = vmatprep.subr.mxu1 %v5330_v6  ;;  %v4555_v39 = vpop.f32.mrf.mxu0 }
  0xeb   :  { %549 = vst.msk [vmem:[#allocation3 + $0x10] sm:$0xff] %vm414_vm2, %v5055_v30  ;;  %4602 = vmatprep.mubr.msk.f32.mxu1 %vm414_vm2, %v5055_v30  ;;  %4608 = vmatpush3.msra.mxu1 %v5330_v6  ;;  %429 = vst.msk [vmem:[#allocation2 + $0x70] sm:$0xff] %vm414_vm2, %v326_v38  ;;  %v341_v40 = vadd.f32 %v4555_v39, %v5504_v45 }
  0xec   :  { %4603 = vmatmul.mubr.msk.f32.gmra.mxu1 %vm414_vm2, %v5053_v29  ;;  %4609 = vmatprep.subr.mxu1 %v5340_v8  ;;  %v1366_v32 = vld [vmem:[#allocation3 + $0x8] sm:$0xff]  ;;  %v335_v41 = vpop.f32.mrf.mxu0 }
  0xed   :  { %4610 = vmatpush3.msra.mxu1 %v5340_v8  ;;  %432 = vst.msk [vmem:[#allocation2 + $0x88] sm:$0xff] %vm414_vm2, %v341_v40  ;;  %v336_v42 = vadd.f32 %v5504_v45, %v335_v41  ;;  %v668_v41 = vld [vmem:[#allocation2 + $0x48] sm:$0xff] }
  0xee   :  { %v1365_v31 = vld [vmem:[#allocation3] sm:$0xff]  ;;  %4611 = vmatprep.subr.mxu1 %v5350_v10  ;;  %v4558_v43 = vpop.f32.mrf.mxu0 }
  0xef   :  { %4697 = vmatprep.mubr.msk.f32.mxu0 %vm414_vm2, %v1365_v31  ;;  %4612 = vmatpush3.msra.mxu1 %v5350_v10  ;;  %431 = vst.msk [vmem:[#allocation2 + $0x80] sm:$0xff] %vm414_vm2, %v336_v42  ;;  %v351_v44 = vadd.f32 %v4558_v43, %v5504_v45 }
  0xf0   :  { %4698 = vmatmul.mubr.msk.f32.vlgmr.msra.gmra.mxu0 %vm414_vm2, %v1366_v32  ;;  %4619 = vmatprep.subr.mxu1 %v5325_v5  ;;  %v1368_v34 = vld [vmem:[#allocation3 + $0x18] sm:$0xff]  ;;  %v345_v46 = vpop.f32.mrf.mxu0 }
  0xf1   :  { %434 = vst.msk [vmem:[#allocation2 + $0x98] sm:$0xff] %vm414_vm2, %v351_v44  ;;  %v346_v47 = vadd.f32 %v5504_v45, %v345_v46  ;;  %v667_v44 = vld [vmem:[#allocation2 + $0x40] sm:$0xff] }
  0xf2   :  { %v1367_v33 = vld [vmem:[#allocation3 + $0x10] sm:$0xff]  ;;  %v4561_v48 = vpop.f32.mrf.mxu0 }
  0xf3   :  { %4700 = vmatprep.mubr.msk.f32.mxu0 %vm414_vm2, %v1367_v33  ;;  %433 = vst.msk [vmem:[#allocation2 + $0x90] sm:$0xff] %vm414_vm2, %v346_v47  ;;  %v361_v49 = vadd.f32 %v4561_v48, %v5504_v45  ;;  %v670_v47 = vld [vmem:[#allocation2 + $0x58] sm:$0xff] }
  0xf4   :  { %4701 = vmatmul.mubr.msk.f32.gmra.mxu0 %vm414_vm2, %v1368_v34  ;;  %v355_v50 = vpop.f32.mrf.mxu0 }
  0xf5   :  { %436 = vst.msk [vmem:[#allocation2 + $0xa8] sm:$0xff] %vm414_vm2, %v361_v49  ;;  %v356_v51 = vadd.f32 %v5504_v45, %v355_v50 }
  0xf6   :  { %v4564_v52 = vpop.f32.mrf.mxu0 }
  0xf7   :  { %435 = vst.msk [vmem:[#allocation2 + $0xa0] sm:$0xff] %vm414_vm2, %v356_v51  ;;  %v371_v53 = vadd.f32 %v4564_v52, %v5504_v45  ;;  %v669_v51 = vld [vmem:[#allocation2 + $0x50] sm:$0xff] }
  0xf8   :  { %v365_v54 = vpop.f32.mrf.mxu0 }
  0xf9   :  { %438 = vst.msk [vmem:[#allocation2 + $0xb8] sm:$0xff] %vm414_vm2, %v371_v53  ;;  %v366_v55 = vadd.f32 %v5504_v45, %v365_v54 }
  0xfa   :  { %v4567_v56 = vpop.f32.mrf.mxu0 }
  0xfb   :  { %437 = vst.msk [vmem:[#allocation2 + $0xb0] sm:$0xff] %vm414_vm2, %v366_v55  ;;  %v381_v57 = vadd.f32 %v4567_v56, %v5504_v45 }
  0xfc   :  { %v375_v58 = vpop.f32.mrf.mxu0 }
  0xfd   :  { %440 = vst.msk [vmem:[#allocation2 + $0xc8] sm:$0xff] %vm414_vm2, %v381_v57  ;;  %v376_v59 = vadd.f32 %v5504_v45, %v375_v58 }
  0xfe   :  { %v4570_v60 = vpop.f32.mrf.mxu0 }
  0xff   :  { %439 = vst.msk [vmem:[#allocation2 + $0xc0] sm:$0xff] %vm414_vm2, %v376_v59  ;;  %v391_v61 = vadd.f32 %v4570_v60, %v5504_v45 }
 0x100   :  { %v385_v62 = vpop.f32.mrf.mxu0 }
 0x101   :  { %442 = vst.msk [vmem:[#allocation2 + $0xd8] sm:$0xff] %vm414_vm2, %v391_v61  ;;  %v386_v63 = vadd.f32 %v5504_v45, %v385_v62 }
 0x102   :  { %v4573_v0 = vpop.f32.mrf.mxu0 }
 0x103   :  { %441 = vst.msk [vmem:[#allocation2 + $0xd0] sm:$0xff] %vm414_vm2, %v386_v63  ;;  %v401_v1 = vadd.f32 %v4573_v0, %v5504_v45 }
 0x104   :  { %v395_v3 = vpop.f32.mrf.mxu0 }
 0x105   :  { %444 = vst.msk [vmem:[#allocation2 + $0xe8] sm:$0xff] %vm414_vm2, %v401_v1  ;;  %v396_v7 = vadd.f32 %v5504_v45, %v395_v3 }
 0x106   :  { %v4576_v4 = vpop.f32.mrf.mxu0 }
 0x107   :  { %443 = vst.msk [vmem:[#allocation2 + $0xe0] sm:$0xff] %vm414_vm2, %v396_v7  ;;  %v411_v9 = vadd.f32 %v4576_v4, %v5504_v45 }
 0x108   :  { %v405_v11 = vpop.f32.mrf.mxu0 }
 0x109   :  { %446 = vst.msk [vmem:[#allocation2 + $0xf8] sm:$0xff] %vm414_vm2, %v411_v9  ;;  %v406_v12 = vadd.f32 %v5504_v45, %v405_v11  ;;  %v783_v11 = vld [vmem:[#allocation2 + $0x68] sm:$0xff] }
 0x10b   :  { %445 = vst.msk [vmem:[#allocation2 + $0xf0] sm:$0xff] %vm414_vm2, %v406_v12 }
 0x1a8   :  { %v4601_v14 = vpop.f32.mrf.mxu1 }
 0x1a9   :  { %v654_v15 = vadd.f32 %v4601_v14, %v553_v13  ;;  %v782_v14 = vld [vmem:[#allocation2 + $0x60] sm:$0xff] }
 0x1aa   :  { %v634_v17 = vpop.f32.mrf.mxu1 }
 0x1ab   :  { %5056 = vtanh.f32 %v654_v15  ;;  %v653_v19 = vadd.f32 %v634_v17, %v552_v16  ;;  %v785_v16 = vld [vmem:[#allocation2 + $0x78] sm:$0xff] }
 0x1ac   :  { %v4604_v20 = vpop.f32.mrf.mxu1 }
 0x1ad   :  { %5058 = vtanh.f32 %v653_v19  ;;  %v656_v21 = vadd.f32 %v4604_v20, %v555_v18  ;;  %v784_v20 = vld [vmem:[#allocation2 + $0x70] sm:$0xff] }
 0x1ae   :  { %v644_v23 = vpop.f32.mrf.mxu1 }
 0x1af   :  { %5060 = vtanh.f32 %v656_v21  ;;  %v655_v45 = vadd.f32 %v644_v23, %v554_v22 }
 0x1b0   :  { %v4699_v25 = vpop.f32.mrf.mxu0 }
 0x1b1   :  { %5062 = vtanh.f32 %v655_v45  ;;  %v1571_v26 = vadd.f32 %v4699_v25, %v5593_v24 }
 0x1b2   :  { %v1565_v27 = vpop.f32.mrf.mxu0 }
 0x1b3   :  { %1725 = vst.msk [vmem:[#allocation2 + $0x8] sm:$0xff] %vm414_vm2, %v1571_v26  ;;  %v1566_v28 = vadd.f32 %v5593_v24, %v1565_v27 }
 0x1b4   :  { %v4702_v29 = vpop.f32.mrf.mxu0 }
 0x1b5   :  { %1724 = vst.msk [vmem:[#allocation2] sm:$0xff] %vm414_vm2, %v1566_v28  ;;  %v1581_v30 = vadd.f32 %v4702_v29, %v5593_v24 }
 0x1b6   :  { %v1575_v31 = vpop.f32.mrf.mxu0 }
 0x1b7   :  { %1727 = vst.msk [vmem:[#allocation2 + $0x18] sm:$0xff] %vm414_vm2, %v1581_v30  ;;  %v1576_v32 = vadd.f32 %v5593_v24, %v1575_v31 }
 0x1b8   :  { %v5057_v33 = vpop.eup %5056 }
 0x1b9   :  { %663 = vst.msk [vmem:[#allocation3 + $0x28] sm:$0xff] %vm414_vm2, %v5057_v33  ;;  %1726 = vst.msk [vmem:[#allocation2 + $0x10] sm:$0xff] %vm414_vm2, %v1576_v32 }
 0x1ba   :  { %v5059_v34 = vpop.eup %5058 }
 0x1bb   :  { %662 = vst.msk [vmem:[#allocation3 + $0x20] sm:$0xff] %vm414_vm2, %v5059_v34  ;;  %4613 = vmatprep.mubr.msk.f32.mxu1 %vm414_vm2, %v5059_v34 }
 0x1bc   :  { %v5061_v35 = vpop.eup %5060  ;;  %4614 = vmatmul.mubr.msk.f32.vlgmr.msra.gmra.mxu1 %vm414_vm2, %v5057_v33 }
 0x1bd   :  { %665 = vst.msk [vmem:[#allocation3 + $0x38] sm:$0xff] %vm414_vm2, %v5061_v35  ;;  %4620 = vmatpush3.msra.mxu1 %v5325_v5 }
 0x1be   :  { %v5063_v36 = vpop.eup %5062  ;;  %4621 = vmatprep.subr.mxu1 %v5330_v6 }
 0x1bf   :  { %664 = vst.msk [vmem:[#allocation3 + $0x30] sm:$0xff] %vm414_vm2, %v5063_v36  ;;  %4616 = vmatprep.mubr.msk.f32.mxu1 %vm414_vm2, %v5063_v36  ;;  %4622 = vmatpush3.msra.mxu1 %v5330_v6 }
 0x1c0   :  { %4617 = vmatmul.mubr.msk.f32.gmra.mxu1 %vm414_vm2, %v5061_v35  ;;  %4623 = vmatprep.subr.mxu1 %v5340_v8  ;;  %v1370_v38 = vld [vmem:[#allocation3 + $0x28] sm:$0xff] }
 0x1c1   :  { %4624 = vmatpush3.msra.mxu1 %v5340_v8 }
 0x1c2   :  { %v1369_v37 = vld [vmem:[#allocation3 + $0x20] sm:$0xff]  ;;  %4625 = vmatprep.subr.mxu1 %v5350_v10 }
 0x1c3   :  { %4703 = vmatprep.mubr.msk.f32.mxu0 %vm414_vm2, %v1369_v37  ;;  %4626 = vmatpush3.msra.mxu1 %v5350_v10 }
 0x1c4   :  { %4704 = vmatmul.mubr.msk.f32.gmra.mxu0 %vm414_vm2, %v1370_v38  ;;  %4633 = vmatprep.subr.mxu1 %v5325_v5  ;;  %v1372_v40 = vld [vmem:[#allocation3 + $0x38] sm:$0xff] }
 0x1c6   :  { %v1371_v39 = vld [vmem:[#allocation3 + $0x30] sm:$0xff] }
 0x1c7   :  { %4706 = vmatprep.mubr.msk.f32.mxu0 %vm414_vm2, %v1371_v39  ;;  %v898_v39 = vld [vmem:[#allocation2 + $0x88] sm:$0xff] }
 0x1c8   :  { %4707 = vmatmul.mubr.msk.f32.gmra.mxu0 %vm414_vm2, %v1372_v40 }
 0x27c   :  { %v4615_v42 = vpop.f32.mrf.mxu1 }
 0x27d   :  { %v769_v43 = vadd.f32 %v4615_v42, %v668_v41  ;;  %v897_v42 = vld [vmem:[#allocation2 + $0x80] sm:$0xff] }
 0x27e   :  { %v749_v46 = vpop.f32.mrf.mxu1 }
 0x27f   :  { %5064 = vtanh.f32 %v769_v43  ;;  %v768_v48 = vadd.f32 %v749_v46, %v667_v44  ;;  %v900_v44 = vld [vmem:[#allocation2 + $0x98] sm:$0xff] }
 0x280   :  { %v4618_v49 = vpop.f32.mrf.mxu1 }
 0x281   :  { %5066 = vtanh.f32 %v768_v48  ;;  %v771_v50 = vadd.f32 %v4618_v49, %v670_v47  ;;  %v899_v49 = vld [vmem:[#allocation2 + $0x90] sm:$0xff] }
 0x282   :  { %v759_v52 = vpop.f32.mrf.mxu1 }
 0x283   :  { %5068 = vtanh.f32 %v771_v50  ;;  %v770_v53 = vadd.f32 %v759_v52, %v669_v51 }
 0x284   :  { %v4705_v54 = vpop.f32.mrf.mxu0 }
 0x285   :  { %5070 = vtanh.f32 %v770_v53  ;;  %v1591_v55 = vadd.f32 %v4705_v54, %v5593_v24 }
 0x286   :  { %v1585_v56 = vpop.f32.mrf.mxu0 }
 0x287   :  { %1729 = vst.msk [vmem:[#allocation2 + $0x28] sm:$0xff] %vm414_vm2, %v1591_v55  ;;  %v1586_v57 = vadd.f32 %v5593_v24, %v1585_v56 }
 0x288   :  { %v4708_v58 = vpop.f32.mrf.mxu0 }
 0x289   :  { %1728 = vst.msk [vmem:[#allocation2 + $0x20] sm:$0xff] %vm414_vm2, %v1586_v57  ;;  %v1601_v59 = vadd.f32 %v4708_v58, %v5593_v24 }
 0x28a   :  { %v1595_v60 = vpop.f32.mrf.mxu0 }
 0x28b   :  { %1731 = vst.msk [vmem:[#allocation2 + $0x38] sm:$0xff] %vm414_vm2, %v1601_v59  ;;  %v1596_v61 = vadd.f32 %v5593_v24, %v1595_v60 }
 0x28c   :  { %v5065_v62 = vpop.eup %5064 }
 0x28d   :  { %778 = vst.msk [vmem:[#allocation3 + $0x48] sm:$0xff] %vm414_vm2, %v5065_v62  ;;  %1730 = vst.msk [vmem:[#allocation2 + $0x30] sm:$0xff] %vm414_vm2, %v1596_v61 }
 0x28e   :  { %v5067_v63 = vpop.eup %5066 }
 0x28f   :  { %777 = vst.msk [vmem:[#allocation3 + $0x40] sm:$0xff] %vm414_vm2, %v5067_v63  ;;  %4627 = vmatprep.mubr.msk.f32.mxu1 %vm414_vm2, %v5067_v63 }
 0x290   :  { %v5069_v0 = vpop.eup %5068  ;;  %4628 = vmatmul.mubr.msk.f32.vlgmr.msra.gmra.mxu1 %vm414_vm2, %v5065_v62 }
 0x291   :  { %780 = vst.msk [vmem:[#allocation3 + $0x58] sm:$0xff] %vm414_vm2, %v5069_v0  ;;  %4634 = vmatpush3.msra.mxu1 %v5325_v5 }
 0x292   :  { %v5071_v1 = vpop.eup %5070  ;;  %4635 = vmatprep.subr.mxu1 %v5330_v6 }
 0x293   :  { %779 = vst.msk [vmem:[#allocation3 + $0x50] sm:$0xff] %vm414_vm2, %v5071_v1  ;;  %4630 = vmatprep.mubr.msk.f32.mxu1 %vm414_vm2, %v5071_v1  ;;  %4636 = vmatpush3.msra.mxu1 %v5330_v6 }
 0x294   :  { %4631 = vmatmul.mubr.msk.f32.gmra.mxu1 %vm414_vm2, %v5069_v0  ;;  %4637 = vmatprep.subr.mxu1 %v5340_v8  ;;  %v1374_v4 = vld [vmem:[#allocation3 + $0x48] sm:$0xff] }
 0x295   :  { %4638 = vmatpush3.msra.mxu1 %v5340_v8 }
 0x296   :  { %v1373_v3 = vld [vmem:[#allocation3 + $0x40] sm:$0xff]  ;;  %4639 = vmatprep.subr.mxu1 %v5350_v10 }
 0x297   :  { %4709 = vmatprep.mubr.msk.f32.mxu0 %vm414_vm2, %v1373_v3  ;;  %4640 = vmatpush3.msra.mxu1 %v5350_v10 }
 0x298   :  { %4710 = vmatmul.mubr.msk.f32.gmra.mxu0 %vm414_vm2, %v1374_v4  ;;  %4647 = vmatprep.subr.mxu1 %v5325_v5  ;;  %v1376_v9 = vld [vmem:[#allocation3 + $0x58] sm:$0xff]  ;;  %v1013_v4 = vld [vmem:[#allocation2 + $0xa8] sm:$0xff] }
 0x29a   :  { %v1375_v7 = vld [vmem:[#allocation3 + $0x50] sm:$0xff] }
 0x29b   :  { %4712 = vmatprep.mubr.msk.f32.mxu0 %vm414_vm2, %v1375_v7 }
 0x29c   :  { %4713 = vmatmul.mubr.msk.f32.gmra.mxu0 %vm414_vm2, %v1376_v9 }
 0x350   :  { %v4629_v12 = vpop.f32.mrf.mxu1 }
 0x351   :  { %v884_v13 = vadd.f32 %v4629_v12, %v783_v11  ;;  %v1012_v11 = vld [vmem:[#allocation2 + $0xa0] sm:$0xff] }
 0x352   :  { %v864_v15 = vpop.f32.mrf.mxu1 }
 0x353   :  { %5072 = vtanh.f32 %v884_v13  ;;  %v883_v17 = vadd.f32 %v864_v15, %v782_v14  ;;  %v1015_v13 = vld [vmem:[#allocation2 + $0xb8] sm:$0xff] }
 0x354   :  { %v4632_v18 = vpop.f32.mrf.mxu1 }
 0x355   :  { %5074 = vtanh.f32 %v883_v17  ;;  %v886_v19 = vadd.f32 %v4632_v18, %v785_v16  ;;  %v1014_v17 = vld [vmem:[#allocation2 + $0xb0] sm:$0xff] }
 0x356   :  { %v874_v21 = vpop.f32.mrf.mxu1 }
 0x357   :  { %5076 = vtanh.f32 %v886_v19  ;;  %v885_v22 = vadd.f32 %v874_v21, %v784_v20 }
 0x358   :  { %v4711_v23 = vpop.f32.mrf.mxu0 }
 0x359   :  { %5078 = vtanh.f32 %v885_v22  ;;  %v1611_v45 = vadd.f32 %v4711_v23, %v5593_v24 }
 0x35a   :  { %v1605_v25 = vpop.f32.mrf.mxu0 }
 0x35b   :  { %1733 = vst.msk [vmem:[#allocation2 + $0x48] sm:$0xff] %vm414_vm2, %v1611_v45  ;;  %v1606_v26 = vadd.f32 %v5593_v24, %v1605_v25 }
 0x35c   :  { %v4714_v27 = vpop.f32.mrf.mxu0 }
 0x35d   :  { %1732 = vst.msk [vmem:[#allocation2 + $0x40] sm:$0xff] %vm414_vm2, %v1606_v26  ;;  %v1621_v28 = vadd.f32 %v4714_v27, %v5593_v24 }
 0x35e   :  { %v1615_v29 = vpop.f32.mrf.mxu0 }
 0x35f   :  { %1735 = vst.msk [vmem:[#allocation2 + $0x58] sm:$0xff] %vm414_vm2, %v1621_v28  ;;  %v1616_v30 = vadd.f32 %v5593_v24, %v1615_v29 }
 0x360   :  { %v5073_v31 = vpop.eup %5072 }
 0x361   :  { %893 = vst.msk [vmem:[#allocation3 + $0x68] sm:$0xff] %vm414_vm2, %v5073_v31  ;;  %1734 = vst.msk [vmem:[#allocation2 + $0x50] sm:$0xff] %vm414_vm2, %v1616_v30 }
 0x362   :  { %v5075_v32 = vpop.eup %5074 }
 0x363   :  { %892 = vst.msk [vmem:[#allocation3 + $0x60] sm:$0xff] %vm414_vm2, %v5075_v32  ;;  %4641 = vmatprep.mubr.msk.f32.mxu1 %vm414_vm2, %v5075_v32  ;;  %v5240_v32 = vld [vmem:[%s6191_s2 + $0x10] sm:$0xff] }
 0x364   :  { %v5077_v33 = vpop.eup %5076  ;;  %4642 = vmatmul.mubr.msk.f32.vlgmr.msra.gmra.mxu1 %vm414_vm2, %v5073_v31 }
 0x365   :  { %895 = vst.msk [vmem:[#allocation3 + $0x78] sm:$0xff] %vm414_vm2, %v5077_v33  ;;  %4648 = vmatpush3.msra.mxu1 %v5325_v5 }
 0x366   :  { %v5079_v34 = vpop.eup %5078  ;;  %4649 = vmatprep.subr.mxu1 %v5330_v6 }
 0x367   :  { %894 = vst.msk [vmem:[#allocation3 + $0x70] sm:$0xff] %vm414_vm2, %v5079_v34  ;;  %4644 = vmatprep.mubr.msk.f32.mxu1 %vm414_vm2, %v5079_v34  ;;  %4650 = vmatpush3.msra.mxu1 %v5330_v6 }
 0x368   :  { %4645 = vmatmul.mubr.msk.f32.gmra.mxu1 %vm414_vm2, %v5077_v33  ;;  %4651 = vmatprep.subr.mxu1 %v5340_v8  ;;  %v1378_v36 = vld [vmem:[#allocation3 + $0x68] sm:$0xff] }
 0x369   :  { %4652 = vmatpush3.msra.mxu1 %v5340_v8  ;;  %v5241_v33 = vld [vmem:[%s6191_s2 + $0x8] sm:$0xff] }
 0x36a   :  { %v1377_v35 = vld [vmem:[#allocation3 + $0x60] sm:$0xff]  ;;  %4653 = vmatprep.subr.mxu1 %v5350_v10 }
 0x36b   :  { %4715 = vmatprep.mubr.msk.f32.mxu0 %vm414_vm2, %v1377_v35  ;;  %4654 = vmatpush3.msra.mxu1 %v5350_v10 }
 0x36c   :  { %4716 = vmatmul.mubr.msk.f32.gmra.mxu0 %vm414_vm2, %v1378_v36  ;;  %4661 = vmatprep.subr.mxu1 %v5325_v5  ;;  %v1380_v38 = vld [vmem:[#allocation3 + $0x78] sm:$0xff] }
 0x36e   :  { %v1379_v37 = vld [vmem:[#allocation3 + $0x70] sm:$0xff] }
 0x36f   :  { %4718 = vmatprep.mubr.msk.f32.mxu0 %vm414_vm2, %v1379_v37  ;;  %v1128_v37 = vld [vmem:[#allocation2 + $0xc8] sm:$0xff] }
 0x370   :  { %4719 = vmatmul.mubr.msk.f32.gmra.mxu0 %vm414_vm2, %v1380_v38 }
 0x424   :  { %v4643_v40 = vpop.f32.mrf.mxu1 }
 0x425   :  { %v999_v41 = vadd.f32 %v4643_v40, %v898_v39  ;;  %v1127_v40 = vld [vmem:[#allocation2 + $0xc0] sm:$0xff] }
 0x426   :  { %v979_v43 = vpop.f32.mrf.mxu1 }
 0x427   :  { %5080 = vtanh.f32 %v999_v41  ;;  %v998_v46 = vadd.f32 %v979_v43, %v897_v42  ;;  %v1130_v41 = vld [vmem:[#allocation2 + $0xd8] sm:$0xff] }
 0x428   :  { %v4646_v47 = vpop.f32.mrf.mxu1 }
 0x429   :  { %5082 = vtanh.f32 %v998_v46  ;;  %v1001_v48 = vadd.f32 %v4646_v47, %v900_v44  ;;  %v1129_v46 = vld [vmem:[#allocation2 + $0xd0] sm:$0xff] }
 0x42a   :  { %v989_v50 = vpop.f32.mrf.mxu1 }
 0x42b   :  { %5084 = vtanh.f32 %v1001_v48  ;;  %v1000_v51 = vadd.f32 %v989_v50, %v899_v49 }
 0x42c   :  { %v4717_v52 = vpop.f32.mrf.mxu0 }
 0x42d   :  { %5086 = vtanh.f32 %v1000_v51  ;;  %v1631_v53 = vadd.f32 %v4717_v52, %v5593_v24 }
 0x42e   :  { %v1625_v54 = vpop.f32.mrf.mxu0 }
 0x42f   :  { %1737 = vst.msk [vmem:[#allocation2 + $0x68] sm:$0xff] %vm414_vm2, %v1631_v53  ;;  %v1626_v55 = vadd.f32 %v5593_v24, %v1625_v54 }
 0x430   :  { %v4720_v56 = vpop.f32.mrf.mxu0 }
 0x431   :  { %1736 = vst.msk [vmem:[#allocation2 + $0x60] sm:$0xff] %vm414_vm2, %v1626_v55  ;;  %v1641_v57 = vadd.f32 %v4720_v56, %v5593_v24 }
 0x432   :  { %v1635_v58 = vpop.f32.mrf.mxu0 }
 0x433   :  { %1739 = vst.msk [vmem:[#allocation2 + $0x78] sm:$0xff] %vm414_vm2, %v1641_v57  ;;  %v1636_v59 = vadd.f32 %v5593_v24, %v1635_v58 }
 0x434   :  { %v5081_v60 = vpop.eup %5080 }
 0x435   :  { %1008 = vst.msk [vmem:[#allocation3 + $0x88] sm:$0xff] %vm414_vm2, %v5081_v60  ;;  %1738 = vst.msk [vmem:[#allocation2 + $0x70] sm:$0xff] %vm414_vm2, %v1636_v59  ;;  %v5757_v59 = vld [vmem:[%s6195_s5 + $0x10] sm:$0xff] }
 0x436   :  { %v5083_v61 = vpop.eup %5082 }
 0x437   :  { %1007 = vst.msk [vmem:[#allocation3 + $0x80] sm:$0xff] %vm414_vm2, %v5083_v61  ;;  %4655 = vmatprep.mubr.msk.f32.mxu1 %vm414_vm2, %v5083_v61  ;;  %v5765_v61 = vld [vmem:[%s6195_s5 + $0x8] sm:$0xff] }
 0x438   :  { %v5085_v62 = vpop.eup %5084  ;;  %4656 = vmatmul.mubr.msk.f32.vlgmr.msra.gmra.mxu1 %vm414_vm2, %v5081_v60 }
 0x439   :  { %1010 = vst.msk [vmem:[#allocation3 + $0x98] sm:$0xff] %vm414_vm2, %v5085_v62  ;;  %4662 = vmatpush3.msra.mxu1 %v5325_v5 }
 0x43a   :  { %v5087_v63 = vpop.eup %5086  ;;  %4663 = vmatprep.subr.mxu1 %v5330_v6 }
 0x43b   :  { %1009 = vst.msk [vmem:[#allocation3 + $0x90] sm:$0xff] %vm414_vm2, %v5087_v63  ;;  %4658 = vmatprep.mubr.msk.f32.mxu1 %vm414_vm2, %v5087_v63  ;;  %4664 = vmatpush3.msra.mxu1 %v5330_v6  ;;  %v5774_v63 = vld [vmem:[%s6195_s5] sm:$0xff] }
 0x43c   :  { %4659 = vmatmul.mubr.msk.f32.gmra.mxu1 %vm414_vm2, %v5085_v62  ;;  %4665 = vmatprep.subr.mxu1 %v5340_v8  ;;  %v1382_v1 = vld [vmem:[#allocation3 + $0x88] sm:$0xff] }
 0x43d   :  { %4666 = vmatpush3.msra.mxu1 %v5340_v8 }
 0x43e   :  { %v1381_v0 = vld [vmem:[#allocation3 + $0x80] sm:$0xff]  ;;  %4667 = vmatprep.subr.mxu1 %v5350_v10 }
 0x43f   :  { %4721 = vmatprep.mubr.msk.f32.mxu0 %vm414_vm2, %v1381_v0  ;;  %4668 = vmatpush3.msra.mxu1 %v5350_v10 }
 0x440   :  { %4722 = vmatmul.mubr.msk.f32.gmra.mxu0 %vm414_vm2, %v1382_v1  ;;  %4675 = vmatprep.subr.mxu1 %v5325_v5  ;;  %v1384_v6 = vld [vmem:[#allocation3 + $0x98] sm:$0xff] }
 0x442   :  { %v1383_v3 = vld [vmem:[#allocation3 + $0x90] sm:$0xff] }
 0x443   :  { %4724 = vmatprep.mubr.msk.f32.mxu0 %vm414_vm2, %v1383_v3 }
 0x444   :  { %4725 = vmatmul.mubr.msk.f32.gmra.mxu0 %vm414_vm2, %v1384_v6 }
 0x4f8   :  { %v4657_v7 = vpop.f32.mrf.mxu1 }
 0x4f9   :  { %v1114_v9 = vadd.f32 %v4657_v7, %v1013_v4  ;;  %v2651_v4 = vld [vmem:[%s6196_s7 + $0x18] sm:$0xff]  ;;  %v2650_v7 = vld [vmem:[%s6196_s7 + $0x10] sm:$0xff] }
 0x4fa   :  { %v1094_v12 = vpop.f32.mrf.mxu1  ;;  %4857 = vmatprep.subr.mxu0 %v2651_v4 }
 0x4fb   :  { %5088 = vtanh.f32 %v1114_v9  ;;  %v1113_v14 = vadd.f32 %v1094_v12, %v1012_v11  ;;  %4858 = vmatpush3.msra.mxu0 %v2651_v4  ;;  %v2649_v9 = vld [vmem:[%s6196_s7 + $0x8] sm:$0xff]  ;;  %v2648_v11 = vld [vmem:[%s6196_s7] sm:$0xff] }
 0x4fc   :  { %v4660_v15 = vpop.f32.mrf.mxu1  ;;  %4859 = vmatprep.subr.mxu0 %v2650_v7  ;;  %v1243_v12 = vld [vmem:[#allocation2 + $0xe8] sm:$0xff]  ;;  %v1857_v4 = vld [vmem:[#allocation2 + $0x20] sm:$0xff] }
 0x4fd   :  { %5090 = vtanh.f32 %v1113_v14  ;;  %v1116_v16 = vadd.f32 %v4660_v15, %v1015_v13  ;;  %4860 = vmatpush3.msra.mxu0 %v2650_v7  ;;  %v1242_v15 = vld [vmem:[#allocation2 + $0xe0] sm:$0xff] }
 0x4fe   :  { %v1104_v18 = vpop.f32.mrf.mxu1  ;;  %4861 = vmatprep.subr.mxu0 %v2649_v9 }
 0x4ff   :  { %5092 = vtanh.f32 %v1116_v16  ;;  %v1115_v19 = vadd.f32 %v1104_v18, %v1014_v17  ;;  %4862 = vmatpush3.msra.mxu0 %v2649_v9  ;;  %v1245_v17 = vld [vmem:[#allocation2 + $0xf8] sm:$0xff] }
 0x500   :  { %v4723_v20 = vpop.f32.mrf.mxu0  ;;  %4863 = vmatprep.subr.mxu0 %v2648_v11 }
 0x501   :  { %5094 = vtanh.f32 %v1115_v19  ;;  %v1651_v21 = vadd.f32 %v4723_v20, %v5593_v24  ;;  %4864 = vmatpush3.msra.mxu0 %v2648_v11 }
 0x502   :  { %v1645_v22 = vpop.f32.mrf.mxu0 }
 0x503   :  { %1741 = vst.msk [vmem:[#allocation2 + $0x88] sm:$0xff] %vm414_vm2, %v1651_v21  ;;  %v1646_v23 = vadd.f32 %v5593_v24, %v1645_v22  ;;  %v1244_v21 = vld [vmem:[#allocation2 + $0xf0] sm:$0xff] }
 0x504   :  { %v4726_v45 = vpop.f32.mrf.mxu0 }
 0x505   :  { %1740 = vst.msk [vmem:[#allocation2 + $0x80] sm:$0xff] %vm414_vm2, %v1646_v23  ;;  %v1661_v25 = vadd.f32 %v4726_v45, %v5593_v24 }
 0x506   :  { %v1655_v26 = vpop.f32.mrf.mxu0 }
 0x507   :  { %1743 = vst.msk [vmem:[#allocation2 + $0x98] sm:$0xff] %vm414_vm2, %v1661_v25  ;;  %v1656_v27 = vadd.f32 %v5593_v24, %v1655_v26  ;;  %v1757_v25 = vld [vmem:[#allocation2 + $0x8] sm:$0xff] }
 0x508   :  { %v5089_v28 = vpop.eup %5088 }
 0x509   :  { %1123 = vst.msk [vmem:[#allocation3 + $0xa8] sm:$0xff] %vm414_vm2, %v5089_v28  ;;  %1742 = vst.msk [vmem:[#allocation2 + $0x90] sm:$0xff] %vm414_vm2, %v1656_v27 }
 0x50a   :  { %v5091_v29 = vpop.eup %5090 }
 0x50b   :  { %1122 = vst.msk [vmem:[#allocation3 + $0xa0] sm:$0xff] %vm414_vm2, %v5091_v29  ;;  %4669 = vmatprep.mubr.msk.f32.mxu1 %vm414_vm2, %v5091_v29 }
 0x50c   :  { %v5093_v30 = vpop.eup %5092  ;;  %4670 = vmatmul.mubr.msk.f32.vlgmr.msra.gmra.mxu1 %vm414_vm2, %v5089_v28 }
 0x50d   :  { %1125 = vst.msk [vmem:[#allocation3 + $0xb8] sm:$0xff] %vm414_vm2, %v5093_v30  ;;  %4676 = vmatpush3.msra.mxu1 %v5325_v5 }
 0x50e   :  { %v5095_v31 = vpop.eup %5094  ;;  %4677 = vmatprep.subr.mxu1 %v5240_v32 }
 0x50f   :  { %1124 = vst.msk [vmem:[#allocation3 + $0xb0] sm:$0xff] %vm414_vm2, %v5095_v31  ;;  %4672 = vmatprep.mubr.msk.f32.mxu1 %vm414_vm2, %v5095_v31  ;;  %4678 = vmatpush3.msra.mxu1 %v5240_v32 }
 0x510   :  { %4673 = vmatmul.mubr.msk.f32.gmra.mxu1 %vm414_vm2, %v5093_v30  ;;  %4679 = vmatprep.subr.mxu1 %v5340_v8  ;;  %v1386_v34 = vld [vmem:[#allocation3 + $0xa8] sm:$0xff]  ;;  %v5740_v8 = vld [vmem:[%s6195_s5 + $0x18] sm:$0xff]  ;;  %v1756_v30 = vld [vmem:[#allocation2] sm:$0xff] }
 0x511   :  { %4680 = vmatpush3.msra.mxu1 %v5241_v33 }
 0x512   :  { %v1385_v5 = vld [vmem:[#allocation3 + $0xa0] sm:$0xff]  ;;  %4681 = vmatprep.subr.mxu1 %v5350_v10 }
 0x513   :  { %4727 = vmatprep.mubr.msk.f32.mxu0 %vm414_vm2, %v1385_v5  ;;  %4682 = vmatpush3.msra.mxu1 %v5350_v10 }
 0x514   :  { %4728 = vmatmul.mubr.msk.f32.gmra.mxu0 %vm414_vm2, %v1386_v34  ;;  %v1388_v36 = vld [vmem:[#allocation3 + $0xb8] sm:$0xff]  ;;  %4745 = vmatprep.subr.mxu1 %v5740_v8 }
 0x515   :  { %v1759_v34 = vld [vmem:[#allocation2 + $0x18] sm:$0xff] }
 0x516   :  { %v1387_v35 = vld [vmem:[#allocation3 + $0xb0] sm:$0xff] }
 0x517   :  { %4730 = vmatprep.mubr.msk.f32.mxu0 %vm414_vm2, %v1387_v35 }
 0x518   :  { %4731 = vmatmul.mubr.msk.f32.gmra.mxu0 %vm414_vm2, %v1388_v36 }
 0x5cc   :  { %v4671_v38 = vpop.f32.mrf.mxu1 }
 0x5cd   :  { %v1229_v39 = vadd.f32 %v4671_v38, %v1128_v37 }
 0x5ce   :  { %v1209_v10 = vpop.f32.mrf.mxu1 }
 0x5cf   :  { %5096 = vtanh.f32 %v1229_v39  ;;  %v1228_v42 = vadd.f32 %v1209_v10, %v1127_v40  ;;  %v1758_v39 = vld [vmem:[#allocation2 + $0x10] sm:$0xff] }
 0x5d0   :  { %v4674_v43 = vpop.f32.mrf.mxu1 }
 0x5d1   :  { %5098 = vtanh.f32 %v1228_v42  ;;  %v1231_v44 = vadd.f32 %v4674_v43, %v1130_v41 }
 0x5d2   :  { %v1219_v47 = vpop.f32.mrf.mxu1 }
 0x5d3   :  { %5100 = vtanh.f32 %v1231_v44  ;;  %v1230_v48 = vadd.f32 %v1219_v47, %v1129_v46 }
 0x5d4   :  { %v4729_v49 = vpop.f32.mrf.mxu0 }
 0x5d5   :  { %5102 = vtanh.f32 %v1230_v48  ;;  %v1671_v50 = vadd.f32 %v4729_v49, %v5593_v24 }
 0x5d6   :  { %v1665_v51 = vpop.f32.mrf.mxu0 }
 0x5d7   :  { %1745 = vst.msk [vmem:[#allocation2 + $0xa8] sm:$0xff] %vm414_vm2, %v1671_v50  ;;  %v1666_v52 = vadd.f32 %v5593_v24, %v1665_v51 }
 0x5d8   :  { %v4732_v53 = vpop.f32.mrf.mxu0 }
 0x5d9   :  { %1744 = vst.msk [vmem:[#allocation2 + $0xa0] sm:$0xff] %vm414_vm2, %v1666_v52  ;;  %v1681_v54 = vadd.f32 %v4732_v53, %v5593_v24 }
 0x5da   :  { %v1675_v55 = vpop.f32.mrf.mxu0 }
 0x5db   :  { %1747 = vst.msk [vmem:[#allocation2 + $0xb8] sm:$0xff] %vm414_vm2, %v1681_v54  ;;  %v1676_v56 = vadd.f32 %v5593_v24, %v1675_v55 }
 0x5dc   :  { %v5097_v57 = vpop.eup %5096 }
 0x5dd   :  { %1238 = vst.msk [vmem:[#allocation3 + $0xc8] sm:$0xff] %vm414_vm2, %v5097_v57  ;;  %1746 = vst.msk [vmem:[#allocation2 + $0xb0] sm:$0xff] %vm414_vm2, %v1676_v56 }
 0x5de   :  { %v5099_v58 = vpop.eup %5098 }
 0x5df   :  { %1237 = vst.msk [vmem:[#allocation3 + $0xc0] sm:$0xff] %vm414_vm2, %v5099_v58  ;;  %4683 = vmatprep.mubr.msk.f32.mxu1 %vm414_vm2, %v5099_v58 }
 0x5e0   :  { %v5101_v60 = vpop.eup %5100  ;;  %4684 = vmatmul.mubr.msk.f32.vlgmr.msra.gmra.mxu1 %vm414_vm2, %v5097_v57 }
 0x5e1   :  { %1240 = vst.msk [vmem:[#allocation3 + $0xd8] sm:$0xff] %vm414_vm2, %v5101_v60  ;;  %4746 = vmatpush3.msra.mxu1 %v5740_v8 }
 0x5e2   :  { %v5103_v62 = vpop.eup %5102  ;;  %4747 = vmatprep.subr.mxu1 %v5757_v59 }
 0x5e3   :  { %1239 = vst.msk [vmem:[#allocation3 + $0xd0] sm:$0xff] %vm414_vm2, %v5103_v62  ;;  %4748 = vmatpush3.msra.mxu1 %v5757_v59  ;;  %4686 = vmatprep.mubr.msk.f32.mxu1 %vm414_vm2, %v5103_v62  ;;  %v1858_v62 = vld [vmem:[#allocation2 + $0x28] sm:$0xff] }
 0x5e4   :  { %4749 = vmatprep.subr.mxu1 %v5765_v61  ;;  %4687 = vmatmul.mubr.msk.f32.gmra.mxu1 %vm414_vm2, %v5101_v60  ;;  %v1390_v1 = vld [vmem:[#allocation3 + $0xc8] sm:$0xff] }
 0x5e5   :  { %4750 = vmatpush3.msra.mxu1 %v5765_v61  ;;  %4753 = vmatprep.mubr.f32.mxu1 %v5242_v2 }
 0x5e6   :  { %4751 = vmatprep.subr.mxu1 %v5774_v63  ;;  %v1389_v0 = vld [vmem:[#allocation3 + $0xc0] sm:$0xff] }
 0x5e7   :  { %4752 = vmatpush3.msra.mxu1 %v5774_v63  ;;  %4733 = vmatprep.mubr.msk.f32.mxu0 %vm414_vm2, %v1389_v0 }
 0x5e8   :  { %4734 = vmatmul.mubr.msk.f32.gmra.mxu0 %vm414_vm2, %v1390_v1  ;;  %4754 = vmatmul.mubr.f32.vlgmr.msra.gmra.mxu1 %v5242_v2  ;;  %v1392_v6 = vld [vmem:[#allocation3 + $0xd8] sm:$0xff] }
 0x5e9   :  { %4756 = vmatprep.mubr.f32.mxu1 %v5242_v2  ;;  %4759 = vmatprep.subr.mxu1 %v5740_v8 }
 0x5ea   :  { %v1391_v3 = vld [vmem:[#allocation3 + $0xd0] sm:$0xff]  ;;  %4760 = vmatpush3.msra.mxu1 %v5740_v8 }
 0x5eb   :  { %4736 = vmatprep.mubr.msk.f32.mxu0 %vm414_vm2, %v1391_v3  ;;  %4761 = vmatprep.subr.mxu1 %v5757_v59 }
 0x5ec   :  { %4737 = vmatmul.mubr.msk.f32.gmra.mxu0 %vm414_vm2, %v1392_v6  ;;  %4757 = vmatmul.mubr.f32.gmra.mxu1 %v5242_v2 }
 0x5ed   :  { %4762 = vmatpush3.msra.mxu1 %v5757_v59 }
 0x5ee   :  { %4763 = vmatprep.subr.mxu1 %v5765_v61 }
 0x5ef   :  { %4764 = vmatpush3.msra.mxu1 %v5765_v61 }
 0x5f0   :  { %4765 = vmatprep.subr.mxu1 %v5774_v63 }
 0x5f1   :  { %4766 = vmatpush3.msra.mxu1 %v5774_v63 }
 0x5f2   :  { %4773 = vmatprep.subr.mxu1 %v5740_v8 }
 0x6a0   :  { %v4685_v13 = vpop.f32.mrf.mxu1 }
 0x6a1   :  { %v1344_v14 = vadd.f32 %v4685_v13, %v1243_v12  ;;  %v1860_v13 = vld [vmem:[#allocation2 + $0x38] sm:$0xff] }
 0x6a2   :  { %v1324_v16 = vpop.f32.mrf.mxu1 }
 0x6a3   :  { %5104 = vtanh.f32 %v1344_v14  ;;  %v1343_v18 = vadd.f32 %v1324_v16, %v1242_v15 }
 0x6a4   :  { %v4688_v19 = vpop.f32.mrf.mxu1 }
 0x6a5   :  { %5106 = vtanh.f32 %v1343_v18  ;;  %v1346_v20 = vadd.f32 %v4688_v19, %v1245_v17  ;;  %v1859_v18 = vld [vmem:[#allocation2 + $0x30] sm:$0xff] }
 0x6a6   :  { %v1334_v22 = vpop.f32.mrf.mxu1 }
 0x6a7   :  { %5108 = vtanh.f32 %v1346_v20  ;;  %v1345_v23 = vadd.f32 %v1334_v22, %v1244_v21  ;;  %v5854_v20 = vld [vmem:[%s6197_s9] ss:$0 sm:$0xff] }
 0x6a8   :  { %v4735_v45 = vpop.f32.mrf.mxu0  ;;  %v4755_v26 = vpop.f32.mrf.mxu1 }
 0x6a9   :  { %5110 = vtanh.f32 %v1345_v23  ;;  %v1691_v27 = vadd.f32 %v4735_v45, %v5593_v24  ;;  %v1846_v28 = vadd.f32 %v4755_v26, %v1757_v25 }
 0x6aa   :  { %v1685_v29 = vpop.f32.mrf.mxu0  ;;  %v1826_v31 = vpop.f32.mrf.mxu1 }
 0x6ab   :  { %1749 = vst.msk [vmem:[#allocation2 + $0xc8] sm:$0xff] %vm414_vm2, %v1691_v27  ;;  %5112 = vtanh.f32 %v1846_v28  ;;  %v1686_v32 = vadd.f32 %v5593_v24, %v1685_v29  ;;  %v1845_v33 = vadd.f32 %v1826_v31, %v1756_v30 }
 0x6ac   :  { %v4738_v5 = vpop.f32.mrf.mxu0  ;;  %v4758_v35 = vpop.f32.mrf.mxu1 }
 0x6ad   :  { %1748 = vst.msk [vmem:[#allocation2 + $0xc0] sm:$0xff] %vm414_vm2, %v1686_v32  ;;  %5114 = vtanh.f32 %v1845_v33  ;;  %v1701_v36 = vadd.f32 %v4738_v5, %v5593_v24  ;;  %v1848_v37 = vadd.f32 %v4758_v35, %v1759_v34 }
 0x6ae   :  { %v1695_v38 = vpop.f32.mrf.mxu0  ;;  %v1836_v40 = vpop.f32.mrf.mxu1 }
 0x6af   :  { %1751 = vst.msk [vmem:[#allocation2 + $0xd8] sm:$0xff] %vm414_vm2, %v1701_v36  ;;  %5116 = vtanh.f32 %v1848_v37  ;;  %v1696_v10 = vadd.f32 %v5593_v24, %v1695_v38  ;;  %v1847_v41 = vadd.f32 %v1836_v40, %v1758_v39  ;;  %v1971_v37 = vld [vmem:[#allocation2 + $0x48] sm:$0xff]  ;;  %v1970_v40 = vld [vmem:[#allocation2 + $0x40] sm:$0xff] }
 0x6b0   :  { %v5105_v42 = vpop.eup %5104 }
 0x6b1   :  { %1353 = vst.msk [vmem:[#allocation3 + $0xe8] sm:$0xff] %vm414_vm2, %v5105_v42  ;;  %1750 = vst.msk [vmem:[#allocation2 + $0xd0] sm:$0xff] %vm414_vm2, %v1696_v10  ;;  %5118 = vtanh.f32 %v1847_v41  ;;  %v1973_v42 = vld [vmem:[#allocation2 + $0x58] sm:$0xff] }
 0x6b2   :  { %v5107_v43 = vpop.eup %5106 }
 0x6b3   :  { %1352 = vst.msk [vmem:[#allocation3 + $0xe0] sm:$0xff] %vm414_vm2, %v5107_v43 }
 0x6b4   :  { %v5109_v44 = vpop.eup %5108 }
 0x6b5   :  { %1355 = vst.msk [vmem:[#allocation3 + $0xf8] sm:$0xff] %vm414_vm2, %v5109_v44 }
 0x6b6   :  { %v5111_v46 = vpop.eup %5110 }
 0x6b7   :  { %1354 = vst.msk [vmem:[#allocation3 + $0xf0] sm:$0xff] %vm414_vm2, %v5111_v46  ;;  %v1972_v46 = vld [vmem:[#allocation2 + $0x50] sm:$0xff] }
 0x6b8   :  { %v5113_v47 = vpop.eup %5112  ;;  %v1394_v50 = vld [vmem:[#allocation3 + $0xe8] sm:$0xff] }
 0x6b9   :  { %1854 = vst.msk [vmem:[#allocation3 + $0x8] sm:$0xff] %vm414_vm2, %v5113_v47 }
 0x6ba   :  { %v5115_v48 = vpop.eup %5114  ;;  %v1393_v49 = vld [vmem:[#allocation3 + $0xe0] sm:$0xff] }
 0x6bb   :  { %1853 = vst.msk [vmem:[#allocation3] sm:$0xff] %vm414_vm2, %v5115_v48  ;;  %4739 = vmatprep.mubr.msk.f32.mxu0 %vm414_vm2, %v1393_v49  ;;  %4767 = vmatprep.mubr.msk.f32.mxu1 %vm414_vm2, %v5115_v48 }
 0x6bc   :  { %v5117_v51 = vpop.eup %5116  ;;  %4740 = vmatmul.mubr.msk.f32.gmra.mxu0 %vm414_vm2, %v1394_v50  ;;  %4768 = vmatmul.mubr.msk.f32.vlgmr.msra.gmra.mxu1 %vm414_vm2, %v5113_v47  ;;  %v1396_v54 = vld [vmem:[#allocation3 + $0xf8] sm:$0xff] }
 0x6bd   :  { %1856 = vst.msk [vmem:[#allocation3 + $0x18] sm:$0xff] %vm414_vm2, %v5117_v51  ;;  %4774 = vmatpush3.msra.mxu1 %v5740_v8 }
 0x6be   :  { %v5119_v52 = vpop.eup %5118  ;;  %v1395_v53 = vld [vmem:[#allocation3 + $0xf0] sm:$0xff]  ;;  %4775 = vmatprep.subr.mxu1 %v5757_v59 }
 0x6bf   :  { %1855 = vst.msk [vmem:[#allocation3 + $0x10] sm:$0xff] %vm414_vm2, %v5119_v52  ;;  %4742 = vmatprep.mubr.msk.f32.mxu0 %vm414_vm2, %v1395_v53  ;;  %4770 = vmatprep.mubr.msk.f32.mxu1 %vm414_vm2, %v5119_v52 }
 0x6c0   :  { %4743 = vmatmul.mubr.msk.f32.gmra.mxu0 %vm414_vm2, %v1396_v54  ;;  %4771 = vmatmul.mubr.msk.f32.gmra.mxu1 %vm414_vm2, %v5117_v51  ;;  %v2658_v56 = vld [vmem:[#allocation3 + $0x8] sm:$0xff] }
 0x6c1   :  { %4776 = vmatpush3.msra.mxu1 %v5757_v59 }
 0x6c2   :  { %v2657_v55 = vld [vmem:[#allocation3] sm:$0xff]  ;;  %4777 = vmatprep.subr.mxu1 %v5765_v61 }
 0x6c3   :  { %4865 = vmatprep.mubr.msk.f32.mxu0 %vm414_vm2, %v2657_v55  ;;  %4778 = vmatpush3.msra.mxu1 %v5765_v61 }
 0x6c4   :  { %4866 = vmatmul.mubr.msk.f32.vlgmr.msra.gmra.mxu0 %vm414_vm2, %v2658_v56  ;;  %4779 = vmatprep.subr.mxu1 %v5774_v63  ;;  %v2660_v58 = vld [vmem:[#allocation3 + $0x18] sm:$0xff] }
 0x6c5   :  { %4780 = vmatpush3.msra.mxu1 %v5774_v63 }
 0x6c6   :  { %v2659_v57 = vld [vmem:[#allocation3 + $0x10] sm:$0xff]  ;;  %4787 = vmatprep.subr.mxu1 %v5740_v8 }
 0x6c7   :  { %4868 = vmatprep.mubr.msk.f32.mxu0 %vm414_vm2, %v2659_v57 }
 0x6c8   :  { %4869 = vmatmul.mubr.msk.f32.gmra.mxu0 %vm414_vm2, %v2660_v58 }
 0x77c   :  { %v4741_v60 = vpop.f32.mrf.mxu0  ;;  %v4769_v0 = vpop.f32.mrf.mxu1 }
 0x77d   :  { %v1711_v1 = vadd.f32 %v4741_v60, %v5593_v24  ;;  %v1959_v3 = vadd.f32 %v4769_v0, %v1858_v62 }
 0x77e   :  { %v1705_v6 = vpop.f32.mrf.mxu0  ;;  %v1939_v7 = vpop.f32.mrf.mxu1 }
 0x77f   :  { %1753 = vst.msk [vmem:[#allocation2 + $0xe8] sm:$0xff] %vm414_vm2, %v1711_v1  ;;  %5120 = vtanh.f32 %v1959_v3  ;;  %v1706_v9 = vadd.f32 %v5593_v24, %v1705_v6  ;;  %v1958_v11 = vadd.f32 %v1939_v7, %v1857_v4  ;;  %v2084_v4 = vld [vmem:[#allocation2 + $0x68] sm:$0xff] }
 0x780   :  { %v4744_v12 = vpop.f32.mrf.mxu0  ;;  %v4772_v14 = vpop.f32.mrf.mxu1 }
 0x781   :  { %1752 = vst.msk [vmem:[#allocation2 + $0xe0] sm:$0xff] %vm414_vm2, %v1706_v9  ;;  %5122 = vtanh.f32 %v1958_v11  ;;  %v1721_v15 = vadd.f32 %v4744_v12, %v5593_v24  ;;  %v1961_v16 = vadd.f32 %v4772_v14, %v1860_v13  ;;  %v2083_v11 = vld [vmem:[#allocation2 + $0x60] sm:$0xff]  ;;  %v2086_v14 = vld [vmem:[#allocation2 + $0x78] sm:$0xff] }
 0x782   :  { %v1715_v17 = vpop.f32.mrf.mxu0  ;;  %v1949_v19 = vpop.f32.mrf.mxu1 }
 0x783   :  { %1755 = vst.msk [vmem:[#allocation2 + $0xf8] sm:$0xff] %vm414_vm2, %v1721_v15  ;;  %5124 = vtanh.f32 %v1961_v16  ;;  %v1716_v21 = vadd.f32 %v5593_v24, %v1715_v17  ;;  %v1960_v22 = vadd.f32 %v1949_v19, %v1859_v18  ;;  %v2085_v17 = vld [vmem:[#allocation2 + $0x70] sm:$0xff] }
 0x784   :  { %v4867_v23 = vpop.f32.mrf.mxu0 }
 0x785   :  { %1754 = vst.msk [vmem:[#allocation2 + $0xf0] sm:$0xff] %vm414_vm2, %v1716_v21  ;;  %5126 = vtanh.f32 %v1960_v22  ;;  %v2863_v45 = vadd.f32 %v4867_v23, %v5854_v20 }
 0x786   :  { %v2857_v25 = vpop.f32.mrf.mxu0 }
 0x787   :  { %3017 = vst.msk [vmem:[#allocation2 + $0x8] sm:$0xff] %vm414_vm2, %v2863_v45  ;;  %v2858_v26 = vadd.f32 %v5854_v20, %v2857_v25 }
 0x788   :  { %v4870_v27 = vpop.f32.mrf.mxu0 }
 0x789   :  { %3016 = vst.msk [vmem:[#allocation2] sm:$0xff] %vm414_vm2, %v2858_v26  ;;  %v2873_v28 = vadd.f32 %v4870_v27, %v5854_v20 }
 0x78a   :  { %v2867_v29 = vpop.f32.mrf.mxu0 }
 0x78b   :  { %3019 = vst.msk [vmem:[#allocation2 + $0x18] sm:$0xff] %vm414_vm2, %v2873_v28  ;;  %v2868_v24 = vadd.f32 %v5854_v20, %v2867_v29 }
 0x78c   :  { %v5121_v30 = vpop.eup %5120 }
 0x78d   :  { %1967 = vst.msk [vmem:[#allocation3 + $0x28] sm:$0xff] %vm414_vm2, %v5121_v30  ;;  %3018 = vst.msk [vmem:[#allocation2 + $0x10] sm:$0xff] %vm414_vm2, %v2868_v24 }
 0x78e   :  { %v5123_v31 = vpop.eup %5122 }
 0x78f   :  { %1966 = vst.msk [vmem:[#allocation3 + $0x20] sm:$0xff] %vm414_vm2, %v5123_v31  ;;  %4781 = vmatprep.mubr.msk.f32.mxu1 %vm414_vm2, %v5123_v31 }
 0x790   :  { %v5125_v32 = vpop.eup %5124  ;;  %4782 = vmatmul.mubr.msk.f32.vlgmr.msra.gmra.mxu1 %vm414_vm2, %v5121_v30 }
 0x791   :  { %1969 = vst.msk [vmem:[#allocation3 + $0x38] sm:$0xff] %vm414_vm2, %v5125_v32  ;;  %4788 = vmatpush3.msra.mxu1 %v5740_v8 }
 0x792   :  { %v5127_v33 = vpop.eup %5126  ;;  %4789 = vmatprep.subr.mxu1 %v5757_v59 }
 0x793   :  { %1968 = vst.msk [vmem:[#allocation3 + $0x30] sm:$0xff] %vm414_vm2, %v5127_v33  ;;  %4784 = vmatprep.mubr.msk.f32.mxu1 %vm414_vm2, %v5127_v33  ;;  %4790 = vmatpush3.msra.mxu1 %v5757_v59 }
 0x794   :  { %4785 = vmatmul.mubr.msk.f32.gmra.mxu1 %vm414_vm2, %v5125_v32  ;;  %4791 = vmatprep.subr.mxu1 %v5765_v61  ;;  %v2662_v34 = vld [vmem:[#allocation3 + $0x28] sm:$0xff] }
 0x795   :  { %4792 = vmatpush3.msra.mxu1 %v5765_v61 }
 0x796   :  { %v2661_v5 = vld [vmem:[#allocation3 + $0x20] sm:$0xff]  ;;  %4793 = vmatprep.subr.mxu1 %v5774_v63 }
 0x797   :  { %4871 = vmatprep.mubr.msk.f32.mxu0 %vm414_vm2, %v2661_v5  ;;  %4794 = vmatpush3.msra.mxu1 %v5774_v63 }
 0x798   :  { %4872 = vmatmul.mubr.msk.f32.gmra.mxu0 %vm414_vm2, %v2662_v34  ;;  %4801 = vmatprep.subr.mxu1 %v5740_v8  ;;  %v2664_v36 = vld [vmem:[#allocation3 + $0x38] sm:$0xff] }
 0x79a   :  { %v2663_v35 = vld [vmem:[#allocation3 + $0x30] sm:$0xff] }
 0x79b   :  { %4874 = vmatprep.mubr.msk.f32.mxu0 %vm414_vm2, %v2663_v35  ;;  %v2197_v35 = vld [vmem:[#allocation2 + $0x88] sm:$0xff] }
 0x79c   :  { %4875 = vmatmul.mubr.msk.f32.gmra.mxu0 %vm414_vm2, %v2664_v36 }
 0x850   :  { %v4783_v38 = vpop.f32.mrf.mxu1 }
 0x851   :  { %v2072_v39 = vadd.f32 %v4783_v38, %v1971_v37  ;;  %v2196_v38 = vld [vmem:[#allocation2 + $0x80] sm:$0xff] }
 0x852   :  { %v2052_v10 = vpop.f32.mrf.mxu1 }
 0x853   :  { %5128 = vtanh.f32 %v2072_v39  ;;  %v2071_v41 = vadd.f32 %v2052_v10, %v1970_v40  ;;  %v2199_v10 = vld [vmem:[#allocation2 + $0x98] sm:$0xff] }
 0x854   :  { %v4786_v43 = vpop.f32.mrf.mxu1 }
 0x855   :  { %5130 = vtanh.f32 %v2071_v41  ;;  %v2074_v44 = vadd.f32 %v4786_v43, %v1973_v42  ;;  %v2198_v43 = vld [vmem:[#allocation2 + $0x90] sm:$0xff] }
 0x856   :  { %v2062_v47 = vpop.f32.mrf.mxu1 }
 0x857   :  { %5132 = vtanh.f32 %v2074_v44  ;;  %v2073_v48 = vadd.f32 %v2062_v47, %v1972_v46 }
 0x858   :  { %v4873_v49 = vpop.f32.mrf.mxu0 }
 0x859   :  { %5134 = vtanh.f32 %v2073_v48  ;;  %v2883_v50 = vadd.f32 %v4873_v49, %v5854_v20 }
 0x85a   :  { %v2877_v51 = vpop.f32.mrf.mxu0 }
 0x85b   :  { %3021 = vst.msk [vmem:[#allocation2 + $0x28] sm:$0xff] %vm414_vm2, %v2883_v50  ;;  %v2878_v52 = vadd.f32 %v5854_v20, %v2877_v51 }
 0x85c   :  { %v4876_v53 = vpop.f32.mrf.mxu0 }
 0x85d   :  { %3020 = vst.msk [vmem:[#allocation2 + $0x20] sm:$0xff] %vm414_vm2, %v2878_v52  ;;  %v2893_v54 = vadd.f32 %v4876_v53, %v5854_v20 }
 0x85e   :  { %v2887_v55 = vpop.f32.mrf.mxu0 }
 0x85f   :  { %3023 = vst.msk [vmem:[#allocation2 + $0x38] sm:$0xff] %vm414_vm2, %v2893_v54  ;;  %v2888_v56 = vadd.f32 %v5854_v20, %v2887_v55 }
 0x860   :  { %v5129_v57 = vpop.eup %5128 }
 0x861   :  { %2080 = vst.msk [vmem:[#allocation3 + $0x48] sm:$0xff] %vm414_vm2, %v5129_v57  ;;  %3022 = vst.msk [vmem:[#allocation2 + $0x30] sm:$0xff] %vm414_vm2, %v2888_v56 }
 0x862   :  { %v5131_v58 = vpop.eup %5130 }
 0x863   :  { %2079 = vst.msk [vmem:[#allocation3 + $0x40] sm:$0xff] %vm414_vm2, %v5131_v58  ;;  %4795 = vmatprep.mubr.msk.f32.mxu1 %vm414_vm2, %v5131_v58 }
 0x864   :  { %v5133_v60 = vpop.eup %5132  ;;  %4796 = vmatmul.mubr.msk.f32.vlgmr.msra.gmra.mxu1 %vm414_vm2, %v5129_v57 }
 0x865   :  { %2082 = vst.msk [vmem:[#allocation3 + $0x58] sm:$0xff] %vm414_vm2, %v5133_v60  ;;  %4802 = vmatpush3.msra.mxu1 %v5740_v8 }
 0x866   :  { %v5135_v62 = vpop.eup %5134  ;;  %4803 = vmatprep.subr.mxu1 %v5757_v59 }
 0x867   :  { %2081 = vst.msk [vmem:[#allocation3 + $0x50] sm:$0xff] %vm414_vm2, %v5135_v62  ;;  %4798 = vmatprep.mubr.msk.f32.mxu1 %vm414_vm2, %v5135_v62  ;;  %4804 = vmatpush3.msra.mxu1 %v5757_v59 }
 0x868   :  { %4799 = vmatmul.mubr.msk.f32.gmra.mxu1 %vm414_vm2, %v5133_v60  ;;  %4805 = vmatprep.subr.mxu1 %v5765_v61  ;;  %v2666_v1 = vld [vmem:[#allocation3 + $0x48] sm:$0xff] }
 0x869   :  { %4806 = vmatpush3.msra.mxu1 %v5765_v61 }
 0x86a   :  { %v2665_v0 = vld [vmem:[#allocation3 + $0x40] sm:$0xff]  ;;  %4807 = vmatprep.subr.mxu1 %v5774_v63 }
 0x86b   :  { %4877 = vmatprep.mubr.msk.f32.mxu0 %vm414_vm2, %v2665_v0  ;;  %4808 = vmatpush3.msra.mxu1 %v5774_v63 }
 0x86c   :  { %4878 = vmatmul.mubr.msk.f32.gmra.mxu0 %vm414_vm2, %v2666_v1  ;;  %4815 = vmatprep.subr.mxu1 %v5740_v8  ;;  %v2668_v6 = vld [vmem:[#allocation3 + $0x58] sm:$0xff] }
 0x86e   :  { %v2667_v3 = vld [vmem:[#allocation3 + $0x50] sm:$0xff] }
 0x86f   :  { %4880 = vmatprep.mubr.msk.f32.mxu0 %vm414_vm2, %v2667_v3  ;;  %v2310_v3 = vld [vmem:[#allocation2 + $0xa8] sm:$0xff] }
 0x870   :  { %4881 = vmatmul.mubr.msk.f32.gmra.mxu0 %vm414_vm2, %v2668_v6 }
 0x924   :  { %v4797_v7 = vpop.f32.mrf.mxu1 }
 0x925   :  { %v2185_v9 = vadd.f32 %v4797_v7, %v2084_v4  ;;  %v2309_v7 = vld [vmem:[#allocation2 + $0xa0] sm:$0xff] }
 0x926   :  { %v2165_v12 = vpop.f32.mrf.mxu1 }
 0x927   :  { %5136 = vtanh.f32 %v2185_v9  ;;  %v2184_v13 = vadd.f32 %v2165_v12, %v2083_v11  ;;  %v2312_v12 = vld [vmem:[#allocation2 + $0xb8] sm:$0xff] }
 0x928   :  { %v4800_v15 = vpop.f32.mrf.mxu1 }
 0x929   :  { %5138 = vtanh.f32 %v2184_v13  ;;  %v2187_v16 = vadd.f32 %v4800_v15, %v2086_v14  ;;  %v2311_v15 = vld [vmem:[#allocation2 + $0xb0] sm:$0xff] }
 0x92a   :  { %v2175_v18 = vpop.f32.mrf.mxu1 }
 0x92b   :  { %5140 = vtanh.f32 %v2187_v16  ;;  %v2186_v19 = vadd.f32 %v2175_v18, %v2085_v17 }
 0x92c   :  { %v4879_v21 = vpop.f32.mrf.mxu0 }
 0x92d   :  { %5142 = vtanh.f32 %v2186_v19  ;;  %v2903_v22 = vadd.f32 %v4879_v21, %v5854_v20 }
 0x92e   :  { %v2897_v23 = vpop.f32.mrf.mxu0 }
 0x92f   :  { %3025 = vst.msk [vmem:[#allocation2 + $0x48] sm:$0xff] %vm414_vm2, %v2903_v22  ;;  %v2898_v45 = vadd.f32 %v5854_v20, %v2897_v23 }
 0x930   :  { %v4882_v25 = vpop.f32.mrf.mxu0 }
 0x931   :  { %3024 = vst.msk [vmem:[#allocation2 + $0x40] sm:$0xff] %vm414_vm2, %v2898_v45  ;;  %v2913_v26 = vadd.f32 %v4882_v25, %v5854_v20 }
 0x932   :  { %v2907_v27 = vpop.f32.mrf.mxu0 }
 0x933   :  { %3027 = vst.msk [vmem:[#allocation2 + $0x58] sm:$0xff] %vm414_vm2, %v2913_v26  ;;  %v2908_v28 = vadd.f32 %v5854_v20, %v2907_v27 }
 0x934   :  { %v5137_v29 = vpop.eup %5136 }
 0x935   :  { %2193 = vst.msk [vmem:[#allocation3 + $0x68] sm:$0xff] %vm414_vm2, %v5137_v29  ;;  %3026 = vst.msk [vmem:[#allocation2 + $0x50] sm:$0xff] %vm414_vm2, %v2908_v28 }
 0x936   :  { %v5139_v24 = vpop.eup %5138 }
 0x937   :  { %2192 = vst.msk [vmem:[#allocation3 + $0x60] sm:$0xff] %vm414_vm2, %v5139_v24  ;;  %4809 = vmatprep.mubr.msk.f32.mxu1 %vm414_vm2, %v5139_v24 }
 0x938   :  { %v5141_v30 = vpop.eup %5140  ;;  %4810 = vmatmul.mubr.msk.f32.vlgmr.msra.gmra.mxu1 %vm414_vm2, %v5137_v29 }
 0x939   :  { %2195 = vst.msk [vmem:[#allocation3 + $0x78] sm:$0xff] %vm414_vm2, %v5141_v30  ;;  %4816 = vmatpush3.msra.mxu1 %v5740_v8 }
 0x93a   :  { %v5143_v31 = vpop.eup %5142  ;;  %4817 = vmatprep.subr.mxu1 %v5757_v59 }
 0x93b   :  { %2194 = vst.msk [vmem:[#allocation3 + $0x70] sm:$0xff] %vm414_vm2, %v5143_v31  ;;  %4812 = vmatprep.mubr.msk.f32.mxu1 %vm414_vm2, %v5143_v31  ;;  %4818 = vmatpush3.msra.mxu1 %v5757_v59 }
 0x93c   :  { %4813 = vmatmul.mubr.msk.f32.gmra.mxu1 %vm414_vm2, %v5141_v30  ;;  %4819 = vmatprep.subr.mxu1 %v5765_v61  ;;  %v2670_v33 = vld [vmem:[#allocation3 + $0x68] sm:$0xff] }
 0x93d   :  { %4820 = vmatpush3.msra.mxu1 %v5765_v61 }
 0x93e   :  { %v2669_v32 = vld [vmem:[#allocation3 + $0x60] sm:$0xff]  ;;  %4821 = vmatprep.subr.mxu1 %v5774_v63 }
 0x93f   :  { %4883 = vmatprep.mubr.msk.f32.mxu0 %vm414_vm2, %v2669_v32  ;;  %4822 = vmatpush3.msra.mxu1 %v5774_v63  ;;  %v2423_v32 = vld [vmem:[#allocation2 + $0xc8] sm:$0xff] }
 0x940   :  { %4884 = vmatmul.mubr.msk.f32.gmra.mxu0 %vm414_vm2, %v2670_v33  ;;  %4829 = vmatprep.subr.mxu1 %v5740_v8  ;;  %v2672_v34 = vld [vmem:[#allocation3 + $0x78] sm:$0xff] }
 0x942   :  { %v2671_v5 = vld [vmem:[#allocation3 + $0x70] sm:$0xff] }
 0x943   :  { %4886 = vmatprep.mubr.msk.f32.mxu0 %vm414_vm2, %v2671_v5 }
 0x944   :  { %4887 = vmatmul.mubr.msk.f32.gmra.mxu0 %vm414_vm2, %v2672_v34  ;;  %v2422_v34 = vld [vmem:[#allocation2 + $0xc0] sm:$0xff] }
 0x9f8   :  { %v4811_v36 = vpop.f32.mrf.mxu1 }
 0x9f9   :  { %v2298_v37 = vadd.f32 %v4811_v36, %v2197_v35  ;;  %v2425_v36 = vld [vmem:[#allocation2 + $0xd8] sm:$0xff] }
 0x9fa   :  { %v2278_v39 = vpop.f32.mrf.mxu1 }
 0x9fb   :  { %5144 = vtanh.f32 %v2298_v37  ;;  %v2297_v40 = vadd.f32 %v2278_v39, %v2196_v38  ;;  %v2424_v39 = vld [vmem:[#allocation2 + $0xd0] sm:$0xff] }
 0x9fc   :  { %v4814_v41 = vpop.f32.mrf.mxu1 }
 0x9fd   :  { %5146 = vtanh.f32 %v2297_v40  ;;  %v2300_v42 = vadd.f32 %v4814_v41, %v2199_v10 }
 0x9fe   :  { %v2288_v44 = vpop.f32.mrf.mxu1 }
 0x9ff   :  { %5148 = vtanh.f32 %v2300_v42  ;;  %v2299_v46 = vadd.f32 %v2288_v44, %v2198_v43 }
 0xa00   :  { %v4885_v47 = vpop.f32.mrf.mxu0 }
 0xa01   :  { %5150 = vtanh.f32 %v2299_v46  ;;  %v2923_v48 = vadd.f32 %v4885_v47, %v5854_v20 }
 0xa02   :  { %v2917_v49 = vpop.f32.mrf.mxu0 }
 0xa03   :  { %3029 = vst.msk [vmem:[#allocation2 + $0x68] sm:$0xff] %vm414_vm2, %v2923_v48  ;;  %v2918_v50 = vadd.f32 %v5854_v20, %v2917_v49 }
 0xa04   :  { %v4888_v51 = vpop.f32.mrf.mxu0 }
 0xa05   :  { %3028 = vst.msk [vmem:[#allocation2 + $0x60] sm:$0xff] %vm414_vm2, %v2918_v50  ;;  %v2933_v52 = vadd.f32 %v4888_v51, %v5854_v20 }
 0xa06   :  { %v2927_v53 = vpop.f32.mrf.mxu0 }
 0xa07   :  { %3031 = vst.msk [vmem:[#allocation2 + $0x78] sm:$0xff] %vm414_vm2, %v2933_v52  ;;  %v2928_v54 = vadd.f32 %v5854_v20, %v2927_v53  ;;  %v6018_v52 = vld [vmem:[%s6198_s8 + $0x10] sm:$0xff] }
 0xa08   :  { %v5145_v55 = vpop.eup %5144 }
 0xa09   :  { %2306 = vst.msk [vmem:[#allocation3 + $0x88] sm:$0xff] %vm414_vm2, %v5145_v55  ;;  %3030 = vst.msk [vmem:[#allocation2 + $0x70] sm:$0xff] %vm414_vm2, %v2928_v54  ;;  %v6026_v54 = vld [vmem:[%s6198_s8 + $0x8] sm:$0xff] }
 0xa0a   :  { %v5147_v56 = vpop.eup %5146 }
 0xa0b   :  { %2305 = vst.msk [vmem:[#allocation3 + $0x80] sm:$0xff] %vm414_vm2, %v5147_v56  ;;  %4823 = vmatprep.mubr.msk.f32.mxu1 %vm414_vm2, %v5147_v56  ;;  %v6035_v56 = vld [vmem:[%s6198_s8] sm:$0xff] }
 0xa0c   :  { %v5149_v57 = vpop.eup %5148  ;;  %4824 = vmatmul.mubr.msk.f32.vlgmr.msra.gmra.mxu1 %vm414_vm2, %v5145_v55 }
 0xa0d   :  { %2308 = vst.msk [vmem:[#allocation3 + $0x98] sm:$0xff] %vm414_vm2, %v5149_v57  ;;  %4830 = vmatpush3.msra.mxu1 %v5740_v8 }
 0xa0e   :  { %v5151_v58 = vpop.eup %5150  ;;  %4831 = vmatprep.subr.mxu1 %v5757_v59 }
 0xa0f   :  { %2307 = vst.msk [vmem:[#allocation3 + $0x90] sm:$0xff] %vm414_vm2, %v5151_v58  ;;  %4826 = vmatprep.mubr.msk.f32.mxu1 %vm414_vm2, %v5151_v58  ;;  %4832 = vmatpush3.msra.mxu1 %v5757_v59 }
 0xa10   :  { %4827 = vmatmul.mubr.msk.f32.gmra.mxu1 %vm414_vm2, %v5149_v57  ;;  %4833 = vmatprep.subr.mxu1 %v5765_v61  ;;  %v2674_v62 = vld [vmem:[#allocation3 + $0x88] sm:$0xff] }
 0xa11   :  { %4834 = vmatpush3.msra.mxu1 %v5765_v61 }
 0xa12   :  { %v2673_v60 = vld [vmem:[#allocation3 + $0x80] sm:$0xff]  ;;  %4835 = vmatprep.subr.mxu1 %v5774_v63 }
 0xa13   :  { %4889 = vmatprep.mubr.msk.f32.mxu0 %vm414_vm2, %v2673_v60  ;;  %4836 = vmatpush3.msra.mxu1 %v5774_v63 }
 0xa14   :  { %4890 = vmatmul.mubr.msk.f32.gmra.mxu0 %vm414_vm2, %v2674_v62  ;;  %4843 = vmatprep.subr.mxu1 %v5740_v8  ;;  %v2676_v1 = vld [vmem:[#allocation3 + $0x98] sm:$0xff] }
 0xa16   :  { %v2675_v0 = vld [vmem:[#allocation3 + $0x90] sm:$0xff] }
 0xa17   :  { %4892 = vmatprep.mubr.msk.f32.mxu0 %vm414_vm2, %v2675_v0  ;;  %v2536_v0 = vld [vmem:[#allocation2 + $0xe8] sm:$0xff] }
 0xa18   :  { %4893 = vmatmul.mubr.msk.f32.gmra.mxu0 %vm414_vm2, %v2676_v1 }
 0xacc   :  { %v4825_v6 = vpop.f32.mrf.mxu1 }
 0xacd   :  { %v2411_v4 = vadd.f32 %v4825_v6, %v2310_v3  ;;  %v2535_v6 = vld [vmem:[#allocation2 + $0xe0] sm:$0xff] }
 0xace   :  { %v2391_v9 = vpop.f32.mrf.mxu1 }
 0xacf   :  { %5152 = vtanh.f32 %v2411_v4  ;;  %v2410_v11 = vadd.f32 %v2391_v9, %v2309_v7 }
 0xad0   :  { %v4828_v13 = vpop.f32.mrf.mxu1 }
 0xad1   :  { %5154 = vtanh.f32 %v2410_v11  ;;  %v2413_v14 = vadd.f32 %v4828_v13, %v2312_v12  ;;  %v2537_v12 = vld [vmem:[#allocation2 + $0xf0] sm:$0xff] }
 0xad2   :  { %v2401_v16 = vpop.f32.mrf.mxu1 }
 0xad3   :  { %5156 = vtanh.f32 %v2413_v14  ;;  %v2412_v17 = vadd.f32 %v2401_v16, %v2311_v15 }
 0xad4   :  { %v4891_v18 = vpop.f32.mrf.mxu0 }
 0xad5   :  { %5158 = vtanh.f32 %v2412_v17  ;;  %v2943_v19 = vadd.f32 %v4891_v18, %v5854_v20  ;;  %v3049_v18 = vld [vmem:[#allocation2 + $0x8] sm:$0xff] }
 0xad6   :  { %v2937_v21 = vpop.f32.mrf.mxu0 }
 0xad7   :  { %3033 = vst.msk [vmem:[#allocation2 + $0x88] sm:$0xff] %vm414_vm2, %v2943_v19  ;;  %v2938_v22 = vadd.f32 %v5854_v20, %v2937_v21 }
 0xad8   :  { %v4894_v23 = vpop.f32.mrf.mxu0 }
 0xad9   :  { %3032 = vst.msk [vmem:[#allocation2 + $0x80] sm:$0xff] %vm414_vm2, %v2938_v22  ;;  %v2953_v45 = vadd.f32 %v4894_v23, %v5854_v20  ;;  %v3048_v22 = vld [vmem:[#allocation2] sm:$0xff] }
 0xada   :  { %v2947_v25 = vpop.f32.mrf.mxu0 }
 0xadb   :  { %3035 = vst.msk [vmem:[#allocation2 + $0x98] sm:$0xff] %vm414_vm2, %v2953_v45  ;;  %v2948_v26 = vadd.f32 %v5854_v20, %v2947_v25 }
 0xadc   :  { %v5153_v27 = vpop.eup %5152 }
 0xadd   :  { %2419 = vst.msk [vmem:[#allocation3 + $0xa8] sm:$0xff] %vm414_vm2, %v5153_v27  ;;  %3034 = vst.msk [vmem:[#allocation2 + $0x90] sm:$0xff] %vm414_vm2, %v2948_v26 }
 0xade   :  { %v5155_v28 = vpop.eup %5154 }
 0xadf   :  { %2418 = vst.msk [vmem:[#allocation3 + $0xa0] sm:$0xff] %vm414_vm2, %v5155_v28  ;;  %4837 = vmatprep.mubr.msk.f32.mxu1 %vm414_vm2, %v5155_v28 }
 0xae0   :  { %v5157_v29 = vpop.eup %5156  ;;  %4838 = vmatmul.mubr.msk.f32.vlgmr.msra.gmra.mxu1 %vm414_vm2, %v5153_v27 }
 0xae1   :  { %2421 = vst.msk [vmem:[#allocation3 + $0xb8] sm:$0xff] %vm414_vm2, %v5157_v29  ;;  %4844 = vmatpush3.msra.mxu1 %v5740_v8 }
 0xae2   :  { %v5159_v24 = vpop.eup %5158  ;;  %4845 = vmatprep.subr.mxu1 %v5757_v59 }
 0xae3   :  { %2420 = vst.msk [vmem:[#allocation3 + $0xb0] sm:$0xff] %vm414_vm2, %v5159_v24  ;;  %4840 = vmatprep.mubr.msk.f32.mxu1 %vm414_vm2, %v5159_v24  ;;  %4846 = vmatpush3.msra.mxu1 %v5757_v59 }
 0xae4   :  { %4841 = vmatmul.mubr.msk.f32.gmra.mxu1 %vm414_vm2, %v5157_v29  ;;  %4847 = vmatprep.subr.mxu1 %v5765_v61  ;;  %v2678_v8 = vld [vmem:[#allocation3 + $0xa8] sm:$0xff]  ;;  %v3051_v29 = vld [vmem:[#allocation2 + $0x18] sm:$0xff] }
 0xae5   :  { %4848 = vmatpush3.msra.mxu1 %v5765_v61  ;;  %v6001_v61 = vld [vmem:[%s6198_s8 + $0x18] sm:$0xff] }
 0xae6   :  { %v2677_v30 = vld [vmem:[#allocation3 + $0xa0] sm:$0xff]  ;;  %4849 = vmatprep.subr.mxu1 %v5774_v63 }
 0xae7   :  { %4895 = vmatprep.mubr.msk.f32.mxu0 %vm414_vm2, %v2677_v30  ;;  %4850 = vmatpush3.msra.mxu1 %v5774_v63 }
 0xae8   :  { %4896 = vmatmul.mubr.msk.f32.gmra.mxu0 %vm414_vm2, %v2678_v8  ;;  %v2680_v59 = vld [vmem:[#allocation3 + $0xb8] sm:$0xff]  ;;  %4913 = vmatprep.subr.mxu1 %v6001_v61  ;;  %v3050_v8 = vld [vmem:[#allocation2 + $0x10] sm:$0xff] }
 0xaea   :  { %v2679_v31 = vld [vmem:[#allocation3 + $0xb0] sm:$0xff] }
 0xaeb   :  { %4898 = vmatprep.mubr.msk.f32.mxu0 %vm414_vm2, %v2679_v31 }
 0xaec   :  { %4899 = vmatmul.mubr.msk.f32.gmra.mxu0 %vm414_vm2, %v2680_v59 }
 0xba0   :  { %v4839_v33 = vpop.f32.mrf.mxu1 }
 0xba1   :  { %v2524_v5 = vadd.f32 %v4839_v33, %v2423_v32 }
 0xba2   :  { %v2504_v63 = vpop.f32.mrf.mxu1 }
 0xba3   :  { %5160 = vtanh.f32 %v2524_v5  ;;  %v2523_v35 = vadd.f32 %v2504_v63, %v2422_v34 }
 0xba4   :  { %v4842_v37 = vpop.f32.mrf.mxu1 }
 0xba5   :  { %5162 = vtanh.f32 %v2523_v35  ;;  %v2526_v38 = vadd.f32 %v4842_v37, %v2425_v36 }
 0xba6   :  { %v2514_v40 = vpop.f32.mrf.mxu1 }
 0xba7   :  { %5164 = vtanh.f32 %v2526_v38  ;;  %v2525_v10 = vadd.f32 %v2514_v40, %v2424_v39 }
 0xba8   :  { %v4897_v41 = vpop.f32.mrf.mxu0 }
 0xba9   :  { %5166 = vtanh.f32 %v2525_v10  ;;  %v2963_v42 = vadd.f32 %v4897_v41, %v5854_v20 }
 0xbaa   :  { %v2957_v43 = vpop.f32.mrf.mxu0 }
 0xbab   :  { %3037 = vst.msk [vmem:[#allocation2 + $0xa8] sm:$0xff] %vm414_vm2, %v2963_v42  ;;  %v2958_v44 = vadd.f32 %v5854_v20, %v2957_v43 }
 0xbac   :  { %v4900_v46 = vpop.f32.mrf.mxu0 }
 0xbad   :  { %3036 = vst.msk [vmem:[#allocation2 + $0xa0] sm:$0xff] %vm414_vm2, %v2958_v44  ;;  %v2973_v47 = vadd.f32 %v4900_v46, %v5854_v20  ;;  %v3146_v46 = vld [vmem:[#allocation2 + $0x28] sm:$0xff] }
 0xbae   :  { %v2967_v48 = vpop.f32.mrf.mxu0 }
 0xbaf   :  { %3039 = vst.msk [vmem:[#allocation2 + $0xb8] sm:$0xff] %vm414_vm2, %v2973_v47  ;;  %v2968_v49 = vadd.f32 %v5854_v20, %v2967_v48 }
 0xbb0   :  { %v5161_v50 = vpop.eup %5160 }
 0xbb1   :  { %2532 = vst.msk [vmem:[#allocation3 + $0xc8] sm:$0xff] %vm414_vm2, %v5161_v50  ;;  %3038 = vst.msk [vmem:[#allocation2 + $0xb0] sm:$0xff] %vm414_vm2, %v2968_v49  ;;  %v3145_v49 = vld [vmem:[#allocation2 + $0x20] sm:$0xff] }
 0xbb2   :  { %v5163_v51 = vpop.eup %5162 }
 0xbb3   :  { %2531 = vst.msk [vmem:[#allocation3 + $0xc0] sm:$0xff] %vm414_vm2, %v5163_v51  ;;  %4851 = vmatprep.mubr.msk.f32.mxu1 %vm414_vm2, %v5163_v51 }
 0xbb4   :  { %v5165_v53 = vpop.eup %5164  ;;  %4852 = vmatmul.mubr.msk.f32.vlgmr.msra.gmra.mxu1 %vm414_vm2, %v5161_v50 }
 0xbb5   :  { %2534 = vst.msk [vmem:[#allocation3 + $0xd8] sm:$0xff] %vm414_vm2, %v5165_v53  ;;  %4914 = vmatpush3.msra.mxu1 %v6001_v61 }
 0xbb6   :  { %v5167_v55 = vpop.eup %5166  ;;  %4915 = vmatprep.subr.mxu1 %v6018_v52 }
 0xbb7   :  { %2533 = vst.msk [vmem:[#allocation3 + $0xd0] sm:$0xff] %vm414_vm2, %v5167_v55  ;;  %4916 = vmatpush3.msra.mxu1 %v6018_v52  ;;  %4854 = vmatprep.mubr.msk.f32.mxu1 %vm414_vm2, %v5167_v55 }
 0xbb8   :  { %4917 = vmatprep.subr.mxu1 %v6026_v54  ;;  %4855 = vmatmul.mubr.msk.f32.gmra.mxu1 %vm414_vm2, %v5165_v53  ;;  %v2682_v58 = vld [vmem:[#allocation3 + $0xc8] sm:$0xff] }
 0xbb9   :  { %4918 = vmatpush3.msra.mxu1 %v6026_v54  ;;  %4921 = vmatprep.mubr.f32.mxu1 %v5242_v2 }
 0xbba   :  { %4919 = vmatprep.subr.mxu1 %v6035_v56  ;;  %v2681_v57 = vld [vmem:[#allocation3 + $0xc0] sm:$0xff] }
 0xbbb   :  { %4920 = vmatpush3.msra.mxu1 %v6035_v56  ;;  %4901 = vmatprep.mubr.msk.f32.mxu0 %vm414_vm2, %v2681_v57 }
 0xbbc   :  { %4902 = vmatmul.mubr.msk.f32.gmra.mxu0 %vm414_vm2, %v2682_v58  ;;  %4922 = vmatmul.mubr.f32.vlgmr.msra.gmra.mxu1 %v5242_v2  ;;  %v2684_v62 = vld [vmem:[#allocation3 + $0xd8] sm:$0xff] }
 0xbbd   :  { %4924 = vmatprep.mubr.f32.mxu1 %v5242_v2  ;;  %4927 = vmatprep.subr.mxu1 %v6001_v61 }
 0xbbe   :  { %v2683_v60 = vld [vmem:[#allocation3 + $0xd0] sm:$0xff]  ;;  %4928 = vmatpush3.msra.mxu1 %v6001_v61 }
 0xbbf   :  { %4904 = vmatprep.mubr.msk.f32.mxu0 %vm414_vm2, %v2683_v60  ;;  %4929 = vmatprep.subr.mxu1 %v6018_v52  ;;  %v3148_v60 = vld [vmem:[#allocation2 + $0x38] sm:$0xff] }
 0xbc0   :  { %4905 = vmatmul.mubr.msk.f32.gmra.mxu0 %vm414_vm2, %v2684_v62  ;;  %4925 = vmatmul.mubr.f32.gmra.mxu1 %v5242_v2  ;;  %v2538_v2 = vld [vmem:[#allocation2 + $0xf8] sm:$0xff] }
 0xbc1   :  { %4930 = vmatpush3.msra.mxu1 %v6018_v52 }
 0xbc2   :  { %4931 = vmatprep.subr.mxu1 %v6026_v54 }
 0xbc3   :  { %4932 = vmatpush3.msra.mxu1 %v6026_v54 }
 0xbc4   :  { %4933 = vmatprep.subr.mxu1 %v6035_v56 }
 0xbc5   :  { %4934 = vmatpush3.msra.mxu1 %v6035_v56 }
 0xbc6   :  { %4941 = vmatprep.subr.mxu1 %v6001_v61 }
 0xc74   :  { %v4853_v1 = vpop.f32.mrf.mxu1 }
 0xc75   :  { %v2637_v3 = vadd.f32 %v4853_v1, %v2536_v0  ;;  %v3147_v1 = vld [vmem:[#allocation2 + $0x30] sm:$0xff] }
 0xc76   :  { %v2617_v4 = vpop.f32.mrf.mxu1 }
 0xc77   :  { %5168 = vtanh.f32 %v2637_v3  ;;  %v2636_v7 = vadd.f32 %v2617_v4, %v2535_v6 }
 0xc78   :  { %v4856_v9 = vpop.f32.mrf.mxu1 }
 0xc79   :  { %5170 = vtanh.f32 %v2636_v7  ;;  %v2639_v11 = vadd.f32 %v4856_v9, %v2538_v2 }
 0xc7a   :  { %v2627_v13 = vpop.f32.mrf.mxu1 }
 0xc7b   :  { %5172 = vtanh.f32 %v2639_v11  ;;  %v2638_v14 = vadd.f32 %v2627_v13, %v2537_v12  ;;  %v3255_v12 = vld [vmem:[#allocation2 + $0x48] sm:$0xff] }
 0xc7c   :  { %v4903_v15 = vpop.f32.mrf.mxu0  ;;  %v4923_v16 = vpop.f32.mrf.mxu1 }
 0xc7d   :  { %5174 = vtanh.f32 %v2638_v14  ;;  %v2983_v17 = vadd.f32 %v4903_v15, %v5854_v20  ;;  %v3138_v19 = vadd.f32 %v4923_v16, %v3049_v18  ;;  %v3254_v14 = vld [vmem:[#allocation2 + $0x40] sm:$0xff]  ;;  %v3257_v18 = vld [vmem:[#allocation2 + $0x58] sm:$0xff] }
 0xc7e   :  { %v2977_v21 = vpop.f32.mrf.mxu0  ;;  %v3118_v23 = vpop.f32.mrf.mxu1 }
 0xc7f   :  { %3041 = vst.msk [vmem:[#allocation2 + $0xc8] sm:$0xff] %vm414_vm2, %v2983_v17  ;;  %v2978_v45 = vadd.f32 %v5854_v20, %v2977_v21  ;;  %v3137_v25 = vadd.f32 %v3118_v23, %v3048_v22  ;;  %v3256_v21 = vld [vmem:[#allocation2 + $0x50] sm:$0xff] }
 0xc80   :  { %v4906_v26 = vpop.f32.mrf.mxu0  ;;  %v4926_v27 = vpop.f32.mrf.mxu1 }
 0xc81   :  { %3040 = vst.msk [vmem:[#allocation2 + $0xc0] sm:$0xff] %vm414_vm2, %v2978_v45  ;;  %5176 = vtanh.f32 %v3137_v25  ;;  %v2993_v28 = vadd.f32 %v4906_v26, %v5854_v20  ;;  %v3140_v24 = vadd.f32 %v4926_v27, %v3051_v29  ;;  %v3364_v29 = vld [vmem:[#allocation2 + $0x68] sm:$0xff] }
 0xc82   :  { %5178 = vtanh.f32 %v3138_v19  ;;  %v2987_v30 = vpop.f32.mrf.mxu0  ;;  %v3128_v31 = vpop.f32.mrf.mxu1 }
 0xc83   :  { %3043 = vst.msk [vmem:[#allocation2 + $0xd8] sm:$0xff] %vm414_vm2, %v2993_v28  ;;  %v2988_v59 = vadd.f32 %v5854_v20, %v2987_v30  ;;  %v3139_v32 = vadd.f32 %v3128_v31, %v3050_v8  ;;  %v3363_v30 = vld [vmem:[#allocation2 + $0x60] sm:$0xff] }
 0xc84   :  { %v5169_v33 = vpop.eup %5168 }
 0xc85   :  { %2645 = vst.msk [vmem:[#allocation3 + $0xe8] sm:$0xff] %vm414_vm2, %v5169_v33  ;;  %3042 = vst.msk [vmem:[#allocation2 + $0xd0] sm:$0xff] %vm414_vm2, %v2988_v59  ;;  %5180 = vtanh.f32 %v3139_v32  ;;  %v3366_v32 = vld [vmem:[#allocation2 + $0x78] sm:$0xff] }
 0xc86   :  { %v5171_v5 = vpop.eup %5170  ;;  %5182 = vtanh.f32 %v3140_v24 }
 0xc87   :  { %2644 = vst.msk [vmem:[#allocation3 + $0xe0] sm:$0xff] %vm414_vm2, %v5171_v5  ;;  %v3365_v5 = vld [vmem:[#allocation2 + $0x70] sm:$0xff] }
 0xc88   :  { %v5173_v34 = vpop.eup %5172 }
 0xc89   :  { %2647 = vst.msk [vmem:[#allocation3 + $0xf8] sm:$0xff] %vm414_vm2, %v5173_v34 }
 0xc8a   :  { %v5175_v63 = vpop.eup %5174 }
 0xc8b   :  { %2646 = vst.msk [vmem:[#allocation3 + $0xf0] sm:$0xff] %vm414_vm2, %v5175_v63 }
 0xc8c   :  { %v2686_v38 = vld [vmem:[#allocation3 + $0xe8] sm:$0xff] }
 0xc8e   :  { %v5177_v35 = vpop.eup %5176  ;;  %v2685_v36 = vld [vmem:[#allocation3 + $0xe0] sm:$0xff] }
 0xc8f   :  { %v5179_v37 = vpop.eup %5178  ;;  %4907 = vmatprep.mubr.msk.f32.mxu0 %vm414_vm2, %v2685_v36  ;;  %4935 = vmatprep.mubr.msk.f32.mxu1 %vm414_vm2, %v5177_v35 }
 0xc90   :  { %4908 = vmatmul.mubr.msk.f32.gmra.mxu0 %vm414_vm2, %v2686_v38  ;;  %4936 = vmatmul.mubr.msk.f32.vlgmr.msra.gmra.mxu1 %vm414_vm2, %v5179_v37  ;;  %v2688_v41 = vld [vmem:[#allocation3 + $0xf8] sm:$0xff] }
 0xc91   :  { %4942 = vmatpush3.msra.mxu1 %v6001_v61 }
 0xc92   :  { %v5181_v39 = vpop.eup %5180  ;;  %v2687_v40 = vld [vmem:[#allocation3 + $0xf0] sm:$0xff]  ;;  %4943 = vmatprep.subr.mxu1 %v6018_v52 }
 0xc93   :  { %v5183_v10 = vpop.eup %5182  ;;  %4910 = vmatprep.mubr.msk.f32.mxu0 %vm414_vm2, %v2687_v40  ;;  %4938 = vmatprep.mubr.msk.f32.mxu1 %vm414_vm2, %v5181_v39  ;;  %v3473_v40 = vld [vmem:[#allocation2 + $0x88] sm:$0xff] }
 0xc94   :  { %4911 = vmatmul.mubr.msk.f32.gmra.mxu0 %vm414_vm2, %v2688_v41  ;;  %4939 = vmatmul.mubr.msk.f32.gmra.mxu1 %vm414_vm2, %v5183_v10  ;;  %v3472_v41 = vld [vmem:[#allocation2 + $0x80] sm:$0xff] }
 0xc95   :  { %4944 = vmatpush3.msra.mxu1 %v6018_v52 }
 0xc96   :  { %4945 = vmatprep.subr.mxu1 %v6026_v54 }
 0xc97   :  { %4946 = vmatpush3.msra.mxu1 %v6026_v54 }
 0xc98   :  { %4947 = vmatprep.subr.mxu1 %v6035_v56 }
 0xc99   :  { %4948 = vmatpush3.msra.mxu1 %v6035_v56 }
 0xc9a   :  { %4955 = vmatprep.subr.mxu1 %v6001_v61 }
 0xd50   :  { %v4909_v42 = vpop.f32.mrf.mxu0  ;;  %v4937_v43 = vpop.f32.mrf.mxu1 }
 0xd51   :  { %v3003_v44 = vadd.f32 %v4909_v42, %v5854_v20  ;;  %v3247_v47 = vadd.f32 %v4937_v43, %v3146_v46  ;;  %v3475_v46 = vld [vmem:[#allocation2 + $0x98] sm:$0xff] }
 0xd52   :  { %v2997_v48 = vpop.f32.mrf.mxu0  ;;  %v3227_v50 = vpop.f32.mrf.mxu1 }
 0xd53   :  { %3045 = vst.msk [vmem:[#allocation2 + $0xe8] sm:$0xff] %vm414_vm2, %v3003_v44  ;;  %v2998_v51 = vadd.f32 %v5854_v20, %v2997_v48  ;;  %v3246_v53 = vadd.f32 %v3227_v50, %v3145_v49  ;;  %v3474_v48 = vld [vmem:[#allocation2 + $0x90] sm:$0xff] }
 0xd54   :  { %v4912_v55 = vpop.f32.mrf.mxu0  ;;  %v4940_v57 = vpop.f32.mrf.mxu1 }
 0xd55   :  { %3044 = vst.msk [vmem:[#allocation2 + $0xe0] sm:$0xff] %vm414_vm2, %v2998_v51  ;;  %5184 = vtanh.f32 %v3246_v53  ;;  %v3013_v58 = vadd.f32 %v4912_v55, %v5854_v20  ;;  %v3249_v62 = vadd.f32 %v4940_v57, %v3148_v60  ;;  %v3582_v60 = vld [vmem:[#allocation2 + $0xa8] sm:$0xff] }
 0xd56   :  { %5186 = vtanh.f32 %v3247_v47  ;;  %v3007_v0 = vpop.f32.mrf.mxu0  ;;  %v3237_v3 = vpop.f32.mrf.mxu1 }
 0xd57   :  { %3047 = vst.msk [vmem:[#allocation2 + $0xf8] sm:$0xff] %vm414_vm2, %v3013_v58  ;;  %v3008_v6 = vadd.f32 %v5854_v20, %v3007_v0  ;;  %v3248_v4 = vadd.f32 %v3237_v3, %v3147_v1  ;;  %v3581_v0 = vld [vmem:[#allocation2 + $0xa0] sm:$0xff] }
 0xd59   :  { %3046 = vst.msk [vmem:[#allocation2 + $0xf0] sm:$0xff] %vm414_vm2, %v3008_v6  ;;  %5188 = vtanh.f32 %v3248_v4  ;;  %v3584_v4 = vld [vmem:[#allocation2 + $0xb8] sm:$0xff] }
 0xd5a   :  { %5190 = vtanh.f32 %v3249_v62 }
 0xd62   :  { %v5185_v7 = vpop.eup %5184 }
 0xd63   :  { %v5187_v2 = vpop.eup %5186  ;;  %4949 = vmatprep.mubr.msk.f32.mxu1 %vm414_vm2, %v5185_v7 }
 0xd64   :  { %4950 = vmatmul.mubr.msk.f32.vlgmr.msra.gmra.mxu1 %vm414_vm2, %v5187_v2  ;;  %v3583_v2 = vld [vmem:[#allocation2 + $0xb0] sm:$0xff] }
 0xd65   :  { %4956 = vmatpush3.msra.mxu1 %v6001_v61 }
 0xd66   :  { %v5189_v9 = vpop.eup %5188  ;;  %4957 = vmatprep.subr.mxu1 %v6018_v52 }
 0xd67   :  { %v5191_v11 = vpop.eup %5190  ;;  %4952 = vmatprep.mubr.msk.f32.mxu1 %vm414_vm2, %v5189_v9  ;;  %4958 = vmatpush3.msra.mxu1 %v6018_v52 }
 0xd68   :  { %4953 = vmatmul.mubr.msk.f32.gmra.mxu1 %vm414_vm2, %v5191_v11  ;;  %4959 = vmatprep.subr.mxu1 %v6026_v54 }
 0xd69   :  { %4960 = vmatpush3.msra.mxu1 %v6026_v54 }
 0xd6a   :  { %4961 = vmatprep.subr.mxu1 %v6035_v56 }
 0xd6b   :  { %4962 = vmatpush3.msra.mxu1 %v6035_v56 }
 0xd6c   :  { %4969 = vmatprep.subr.mxu1 %v6001_v61 }
 0xe24   :  { %v4951_v20 = vpop.f32.mrf.mxu1 }
 0xe25   :  { %v3356_v13 = vadd.f32 %v4951_v20, %v3255_v12 }
 0xe26   :  { %v3336_v15 = vpop.f32.mrf.mxu1 }
 0xe27   :  { %v3355_v16 = vadd.f32 %v3336_v15, %v3254_v14  ;;  %v3910_v15 = vld [vmem:[%s6199_s10 + $0x10] sm:$0xff] }
 0xe28   :  { %v4954_v17 = vpop.f32.mrf.mxu1 }
 0xe29   :  { %5192 = vtanh.f32 %v3355_v16  ;;  %v3358_v19 = vadd.f32 %v4954_v17, %v3257_v18  ;;  %v3690_v17 = vld [vmem:[#allocation2 + $0xc0] sm:$0xff] }
 0xe2a   :  { %5194 = vtanh.f32 %v3356_v13  ;;  %v3346_v22 = vpop.f32.mrf.mxu1 }
 0xe2b   :  { %v3357_v23 = vadd.f32 %v3346_v22, %v3256_v21  ;;  %v3693_v22 = vld [vmem:[#allocation2 + $0xd8] sm:$0xff] }
 0xe2d   :  { %5196 = vtanh.f32 %v3357_v23 }
 0xe2e   :  { %5198 = vtanh.f32 %v3358_v19 }
 0xe36   :  { %v5193_v45 = vpop.eup %5192 }
 0xe37   :  { %v5195_v25 = vpop.eup %5194  ;;  %4963 = vmatprep.mubr.msk.f32.mxu1 %vm414_vm2, %v5193_v45  ;;  %v3692_v45 = vld [vmem:[#allocation2 + $0xd0] sm:$0xff] }
 0xe38   :  { %4964 = vmatmul.mubr.msk.f32.vlgmr.msra.gmra.mxu1 %vm414_vm2, %v5195_v25 }
 0xe39   :  { %4970 = vmatpush3.msra.mxu1 %v6001_v61 }
 0xe3a   :  { %v5197_v26 = vpop.eup %5196  ;;  %4971 = vmatprep.subr.mxu1 %v6018_v52 }
 0xe3b   :  { %v5199_v27 = vpop.eup %5198  ;;  %4966 = vmatprep.mubr.msk.f32.mxu1 %vm414_vm2, %v5197_v26  ;;  %4972 = vmatpush3.msra.mxu1 %v6018_v52 }
 0xe3c   :  { %4967 = vmatmul.mubr.msk.f32.gmra.mxu1 %vm414_vm2, %v5199_v27  ;;  %4973 = vmatprep.subr.mxu1 %v6026_v54 }
 0xe3d   :  { %4974 = vmatpush3.msra.mxu1 %v6026_v54 }
 0xe3e   :  { %4975 = vmatprep.subr.mxu1 %v6035_v56 }
 0xe3f   :  { %4976 = vmatpush3.msra.mxu1 %v6035_v56 }
 0xe40   :  { %4983 = vmatprep.subr.mxu1 %v6001_v61 }
 0xef8   :  { %v4965_v28 = vpop.f32.mrf.mxu1 }
 0xef9   :  { %v3465_v24 = vadd.f32 %v4965_v28, %v3364_v29 }
 0xefa   :  { %v3445_v8 = vpop.f32.mrf.mxu1 }
 0xefb   :  { %v3464_v31 = vadd.f32 %v3445_v8, %v3363_v30  ;;  %v3908_v30 = vld [vmem:[%s6199_s10] sm:$0xff] }
 0xefc   :  { %v4968_v59 = vpop.f32.mrf.mxu1 }
 0xefd   :  { %5200 = vtanh.f32 %v3464_v31  ;;  %v3467_v33 = vadd.f32 %v4968_v59, %v3366_v32  ;;  %v3800_v31 = vld [vmem:[#allocation2 + $0xe8] sm:$0xff]  ;;  %v3799_v32 = vld [vmem:[#allocation2 + $0xe0] sm:$0xff] }
 0xefe   :  { %5202 = vtanh.f32 %v3465_v24  ;;  %v3455_v34 = vpop.f32.mrf.mxu1 }
 0xeff   :  { %v3466_v63 = vadd.f32 %v3455_v34, %v3365_v5 }
 0xf01   :  { %5204 = vtanh.f32 %v3466_v63  ;;  %v3802_v63 = vld [vmem:[#allocation2 + $0xf8] sm:$0xff] }
 0xf02   :  { %5206 = vtanh.f32 %v3467_v33 }
 0xf0a   :  { %v5201_v35 = vpop.eup %5200 }
 0xf0b   :  { %v5203_v36 = vpop.eup %5202  ;;  %4977 = vmatprep.mubr.msk.f32.mxu1 %vm414_vm2, %v5201_v35 }
 0xf0c   :  { %4978 = vmatmul.mubr.msk.f32.vlgmr.msra.gmra.mxu1 %vm414_vm2, %v5203_v36  ;;  %v3801_v36 = vld [vmem:[#allocation2 + $0xf0] sm:$0xff] }
 0xf0d   :  { %4984 = vmatpush3.msra.mxu1 %v6001_v61 }
 0xf0e   :  { %v5205_v37 = vpop.eup %5204  ;;  %4985 = vmatprep.subr.mxu1 %v6018_v52 }
 0xf0f   :  { %v5207_v38 = vpop.eup %5206  ;;  %4980 = vmatprep.mubr.msk.f32.mxu1 %vm414_vm2, %v5205_v37  ;;  %4986 = vmatpush3.msra.mxu1 %v6018_v52 }
 0xf10   :  { %4981 = vmatmul.mubr.msk.f32.gmra.mxu1 %vm414_vm2, %v5207_v38  ;;  %4987 = vmatprep.subr.mxu1 %v6026_v54 }
 0xf11   :  { %4988 = vmatpush3.msra.mxu1 %v6026_v54 }
 0xf12   :  { %4989 = vmatprep.subr.mxu1 %v6035_v56 }
 0xf13   :  { %4990 = vmatpush3.msra.mxu1 %v6035_v56 }
 0xf14   :  { %4997 = vmatprep.subr.mxu1 %v6001_v61 }
 0xfcc   :  { %v4979_v39 = vpop.f32.mrf.mxu1 }
 0xfcd   :  { %v3574_v10 = vadd.f32 %v4979_v39, %v3473_v40 }
 0xfce   :  { %v3554_v42 = vpop.f32.mrf.mxu1 }
 0xfcf   :  { %v3573_v43 = vadd.f32 %v3554_v42, %v3472_v41  ;;  %v4208_v42 = vld [vmem:[%s6200_s11] ss:$0 sm:$0xff] }
 0xfd0   :  { %v4982_v44 = vpop.f32.mrf.mxu1 }
 0xfd1   :  { %5208 = vtanh.f32 %v3573_v43  ;;  %v3576_v47 = vadd.f32 %v4982_v44, %v3475_v46 }
 0xfd2   :  { %5210 = vtanh.f32 %v3574_v10  ;;  %v3564_v49 = vpop.f32.mrf.mxu1 }
 0xfd3   :  { %v3575_v50 = vadd.f32 %v3564_v49, %v3474_v48 }
 0xfd5   :  { %5212 = vtanh.f32 %v3575_v50 }
 0xfd6   :  { %5214 = vtanh.f32 %v3576_v47 }
 0xfde   :  { %v5209_v51 = vpop.eup %5208 }
 0xfdf   :  { %v5211_v53 = vpop.eup %5210  ;;  %4991 = vmatprep.mubr.msk.f32.mxu1 %vm414_vm2, %v5209_v51 }
 0xfe0   :  { %4992 = vmatmul.mubr.msk.f32.vlgmr.msra.gmra.mxu1 %vm414_vm2, %v5211_v53 }
 0xfe1   :  { %4998 = vmatpush3.msra.mxu1 %v6001_v61 }
 0xfe2   :  { %v5213_v55 = vpop.eup %5212  ;;  %4999 = vmatprep.subr.mxu1 %v6018_v52 }
 0xfe3   :  { %v5215_v57 = vpop.eup %5214  ;;  %4994 = vmatprep.mubr.msk.f32.mxu1 %vm414_vm2, %v5213_v55  ;;  %5000 = vmatpush3.msra.mxu1 %v6018_v52 }
 0xfe4   :  { %4995 = vmatmul.mubr.msk.f32.gmra.mxu1 %vm414_vm2, %v5215_v57  ;;  %5001 = vmatprep.subr.mxu1 %v6026_v54 }
 0xfe5   :  { %5002 = vmatpush3.msra.mxu1 %v6026_v54 }
 0xfe6   :  { %5003 = vmatprep.subr.mxu1 %v6035_v56 }
 0xfe7   :  { %5004 = vmatpush3.msra.mxu1 %v6035_v56 }
 0xfe8   :  { %5011 = vmatprep.subr.mxu1 %v6001_v61 }
0x10a0   :  { %v4993_v58 = vpop.f32.mrf.mxu1 }
0x10a1   :  { %v3683_v62 = vadd.f32 %v4993_v58, %v3582_v60 }
0x10a2   :  { %v3663_v1 = vpop.f32.mrf.mxu1 }
0x10a3   :  { %v3682_v3 = vadd.f32 %v3663_v1, %v3581_v0 }
0x10a4   :  { %v4996_v6 = vpop.f32.mrf.mxu1 }
0x10a5   :  { %5216 = vtanh.f32 %v3682_v3  ;;  %v3685_v7 = vadd.f32 %v4996_v6, %v3584_v4 }
0x10a6   :  { %5218 = vtanh.f32 %v3683_v62  ;;  %v3673_v9 = vpop.f32.mrf.mxu1 }
0x10a7   :  { %v3684_v11 = vadd.f32 %v3673_v9, %v3583_v2 }
0x10a9   :  { %5220 = vtanh.f32 %v3684_v11 }
0x10aa   :  { %5222 = vtanh.f32 %v3685_v7 }
0x10b2   :  { %v5217_v20 = vpop.eup %5216 }
0x10b3   :  { %v5219_v12 = vpop.eup %5218  ;;  %5005 = vmatprep.mubr.msk.f32.mxu1 %vm414_vm2, %v5217_v20 }
0x10b4   :  { %5006 = vmatmul.mubr.msk.f32.vlgmr.msra.gmra.mxu1 %vm414_vm2, %v5219_v12 }
0x10b5   :  { %5012 = vmatpush3.msra.mxu1 %v6001_v61  ;;  %v3911_v61 = vld [vmem:[%s6199_s10 + $0x18] sm:$0xff] }
0x10b6   :  { %v5221_v13 = vpop.eup %5220  ;;  %5013 = vmatprep.subr.mxu1 %v6018_v52  ;;  %5025 = vmatprep.subr.mxu0 %v3911_v61 }
0x10b7   :  { %v5223_v14 = vpop.eup %5222  ;;  %5008 = vmatprep.mubr.msk.f32.mxu1 %vm414_vm2, %v5221_v13  ;;  %5014 = vmatpush3.msra.mxu1 %v6018_v52  ;;  %v3909_v52 = vld [vmem:[%s6199_s10 + $0x8] sm:$0xff] }
0x10b8   :  { %5009 = vmatmul.mubr.msk.f32.gmra.mxu1 %vm414_vm2, %v5223_v14  ;;  %5015 = vmatprep.subr.mxu1 %v6026_v54 }
0x10b9   :  { %5016 = vmatpush3.msra.mxu1 %v6026_v54  ;;  %5026 = vmatpush3.msra.mxu0 %v3911_v61 }
0x10ba   :  { %5017 = vmatprep.subr.mxu1 %v6035_v56  ;;  %5027 = vmatprep.subr.mxu0 %v3910_v15 }
0x10bb   :  { %5018 = vmatpush3.msra.mxu1 %v6035_v56  ;;  %5028 = vmatpush3.msra.mxu0 %v3910_v15  ;;  %v3691_v56 = vld [vmem:[#allocation2 + $0xc8] sm:$0xff] }
0x10bc   :  { %5039 = vmatprep.subr.mxu1 %v3911_v61  ;;  %5029 = vmatprep.subr.mxu0 %v3909_v52 }
0x10bd   :  { %5030 = vmatpush3.msra.mxu0 %v3909_v52 }
0x10be   :  { %5031 = vmatprep.subr.mxu0 %v3908_v30 }
0x10bf   :  { %5032 = vmatpush3.msra.mxu0 %v3908_v30 }
0x1174   :  { %v5007_v54 = vpop.f32.mrf.mxu1 }
0x1175   :  { %v3792_v16 = vadd.f32 %v5007_v54, %v3691_v56 }
0x1176   :  { %v3772_v18 = vpop.f32.mrf.mxu1 }
0x1177   :  { %v3791_v19 = vadd.f32 %v3772_v18, %v3690_v17 }
0x1178   :  { %v5010_v21 = vpop.f32.mrf.mxu1 }
0x1179   :  { %5224 = vtanh.f32 %v3791_v19  ;;  %v3794_v23 = vadd.f32 %v5010_v21, %v3693_v22 }
0x117a   :  { %5226 = vtanh.f32 %v3792_v16  ;;  %v3782_v25 = vpop.f32.mrf.mxu1 }
0x117b   :  { %v3793_v26 = vadd.f32 %v3782_v25, %v3692_v45 }
0x117d   :  { %5228 = vtanh.f32 %v3793_v26 }
0x117e   :  { %5230 = vtanh.f32 %v3794_v23 }
0x1186   :  { %v5225_v27 = vpop.eup %5224 }
0x1187   :  { %v5227_v28 = vpop.eup %5226  ;;  %5019 = vmatprep.mubr.msk.f32.mxu1 %vm414_vm2, %v5225_v27 }
0x1188   :  { %5020 = vmatmul.mubr.msk.f32.vlgmr.msra.gmra.mxu1 %vm414_vm2, %v5227_v28 }
0x1189   :  { %5043 = vmatpush3.msra.mxu1 %v3911_v61 }
0x118a   :  { %v5229_v29 = vpop.eup %5228  ;;  %5040 = vmatprep.subr.mxu1 %v3910_v15 }
0x118b   :  { %v5231_v24 = vpop.eup %5230  ;;  %5022 = vmatprep.mubr.msk.f32.mxu1 %vm414_vm2, %v5229_v29  ;;  %5044 = vmatpush3.msra.mxu1 %v3910_v15 }
0x118c   :  { %5023 = vmatmul.mubr.msk.f32.gmra.mxu1 %vm414_vm2, %v5231_v24  ;;  %5041 = vmatprep.subr.mxu1 %v3909_v52 }
0x118d   :  { %5045 = vmatpush3.msra.mxu1 %v3909_v52 }
0x118e   :  { %5042 = vmatprep.subr.mxu1 %v3908_v30 }
0x118f   :  { %5046 = vmatpush3.msra.mxu1 %v3908_v30 }
0x1248   :  { %v5021_v8 = vpop.f32.mrf.mxu1 }
0x1249   :  { %v3901_v59 = vadd.f32 %v5021_v8, %v3800_v31 }
0x124a   :  { %v3881_v33 = vpop.f32.mrf.mxu1 }
0x124b   :  { %v3900_v5 = vadd.f32 %v3881_v33, %v3799_v32 }
0x124c   :  { %v5024_v34 = vpop.f32.mrf.mxu1 }
0x124d   :  { %5232 = vtanh.f32 %v3900_v5  ;;  %v3903_v35 = vadd.f32 %v5024_v34, %v3802_v63 }
0x124e   :  { %5234 = vtanh.f32 %v3901_v59  ;;  %v3891_v37 = vpop.f32.mrf.mxu1 }
0x124f   :  { %v3902_v38 = vadd.f32 %v3891_v37, %v3801_v36 }
0x1251   :  { %5236 = vtanh.f32 %v3902_v38 }
0x1252   :  { %5238 = vtanh.f32 %v3903_v35 }
0x125a   :  { %v5233_v39 = vpop.eup %5232 }
0x125b   :  { %v5235_v40 = vpop.eup %5234  ;;  %5033 = vmatprep.mubr.msk.f32.mxu0 %vm414_vm2, %v5233_v39 }
0x125c   :  { %5034 = vmatmul.mubr.msk.f32.vlgmr.msra.gmra.mxu0 %vm414_vm2, %v5235_v40 }
0x125e   :  { %v5237_v10 = vpop.eup %5236 }
0x125f   :  { %v5239_v41 = vpop.eup %5238  ;;  %5036 = vmatprep.mubr.msk.f32.mxu1 %vm414_vm2, %v5237_v10 }
0x1260   :  { %5037 = vmatmul.mubr.msk.f32.vlgmr.msra.gmra.mxu1 %vm414_vm2, %v5239_v41 }
0x131c   :  { %v5035_v43 = vpop.f32.mrf.mxu0 }
0x131d   :  { %v4003_v44 = vadd.f32 %v5035_v43, %v4208_v42 }
0x131e   :  { %v3997_v46 = vpop.f32.mrf.mxu0 }
0x131f   :  { %4017 = vst [vmem:[%s6201_s12 + $0x8] sm:$0xff] %v4003_v44  ;;  %v3998_v47 = vadd.f32 %v4208_v42, %v3997_v46 }
0x1320   :  { %v5038_v48 = vpop.f32.mrf.mxu1 }
0x1321   :  { %4016 = vst [vmem:[%s6201_s12] sm:$0xff] %v3998_v47  ;;  %v4013_v49 = vadd.f32 %v5038_v48, %v4208_v42 }
0x1322   :  { %v4007_v50 = vpop.f32.mrf.mxu1 }
0x1323   :  { %4019 = vst [vmem:[%s6201_s12 + $0x18] sm:$0xff] %v4013_v49  ;;  %v4008_v51 = vadd.f32 %v4208_v42, %v4007_v50 }
0x1325   :  { %4018 = vst [vmem:[%s6201_s12 + $0x10] sm:$0xff] %v4008_v51 }

</bundles_post_ra>
